<compile_context>
chip_gen: v6e
topology: v6e:2x2x1
jax: 0.10.0
libtpu: 0.0.40
codegen_flags: <defaults>
</compile_context>

<pallas_src>
import functools
import numpy as np
import jax
import jax.numpy as jnp
from jax import lax
from jax.experimental import pallas as pl
from jax.experimental.pallas import tpu as pltpu


# ----------------------------- Pallas LSTM recurrence kernel ------------------

def _choose_time_block(T, B, H, max_block=32, vmem_budget_bytes=8 * 1024 * 1024):
    """Largest divisor of T <= max_block whose pipelined blocks fit the budget."""
    def block_bytes(blk):
        gates = blk * B * 4 * H * 4          # f32 gates block
        y = blk * B * H * 4                  # f32 output block
        return 2 * (gates + y)               # double-buffered in/out
    for blk in range(min(T, max_block), 0, -1):
        if T % blk == 0 and block_bytes(blk) <= vmem_budget_bytes:
            return blk
    return 1


def lstm_recurrence_kernel(gx_ref, whh_ref, h0_ref, c0_ref,
                           y_ref, hN_ref, cN_ref, h_sc, c_sc):
    """TBLK timesteps of a single-layer LSTM recurrence.

    gx_ref:  (TBLK, B, 4H) f32  -- precomputed x_t @ W_ih^T + (b_ih + b_hh)
    whh_ref: (H, 4H)       bf16 -- resident recurrent weight (transposed)
    h0/c0:   (B, H)        f32  -- initial state (read only at grid step 0)
    y_ref:   (TBLK, B, H)  f32  -- hidden outputs for this time block
    hN/cN:   (B, H)        f32  -- final state (written only at the last grid step)
    h_sc/c_sc: VMEM scratch carrying state across grid steps.
    PyTorch gate order: i, f, g, o.
    """
    s = pl.program_id(0)

    @pl.when(s == 0)
    def _():
        h_sc[...] = h0_ref[...]
        c_sc[...] = c0_ref[...]

    H = h_sc.shape[1]
    tblk = gx_ref.shape[0]

    def step(t, carry):
        h, c = carry
        # bf16 operands on the MXU, f32 accumulation; element-wise math in f32.
        gates = gx_ref[t] + jnp.dot(
            h.astype(jnp.bfloat16), whh_ref[...],
            preferred_element_type=jnp.float32)                 # (B, 4H) f32
        i_g = jax.nn.sigmoid(gates[:, 0 * H:1 * H])
        f_g = jax.nn.sigmoid(gates[:, 1 * H:2 * H])
        g_g = jnp.tanh(gates[:, 2 * H:3 * H])
        o_g = jax.nn.sigmoid(gates[:, 3 * H:4 * H])
        c_new = f_g * c + i_g * g_g
        h_new = o_g * jnp.tanh(c_new)
        y_ref[t] = h_new.astype(y_ref.dtype)
        return h_new, c_new

    # Fully unrolled: static trip count -> LLO scheduler sees the whole block,
    # and the y_ref[t] store indices become compile-time constants.
    h_fin, c_fin = lax.fori_loop(0, tblk, step, (h_sc[...], c_sc[...]),
                                 unroll=True)

    h_sc[...] = h_fin
    c_sc[...] = c_fin

    @pl.when(s == pl.num_programs(0) - 1)
    def _():
        hN_ref[...] = h_fin
        cN_ref[...] = c_fin


def lstm_layer_pallas(x, w_ih, w_hh, b_ih, b_hh, h0, c0, *, max_time_block=32):
    """Full LSTM layer over the sequence.

    x:    (T, B, I) float32
    w_ih: (4H, I), w_hh: (4H, H), b_ih/b_hh: (4H,)
    h0, c0: (B, H)
    Returns y (T, B, H), h_final (B, H), c_final (B, H).
    """
    T, B, I = x.shape
    H = w_hh.shape[1]
    tblk = _choose_time_block(T, B, H, max_time_block)

    # Hoisted input projection for ALL timesteps: one MXU-friendly GEMM with
    # M = T*B instead of T tiny M=B matmuls, both biases folded in.
    bias = (b_ih + b_hh).astype(jnp.float32)                     # (4H,)
    gates_x = jnp.einsum(
        "tbi,ig->tbg",
        x.astype(jnp.bfloat16), jnp.asarray(w_ih).T.astype(jnp.bfloat16),
        preferred_element_type=jnp.float32) + bias               # (T, B, 4H) f32

    whh_t = jnp.asarray(w_hh).T.astype(jnp.bfloat16)             # (H, 4H) bf16, resident

    out_shapes = (
        jax.ShapeDtypeStruct((T, B, H), jnp.float32),
        jax.ShapeDtypeStruct((B, H), jnp.float32),
        jax.ShapeDtypeStruct((B, H), jnp.float32),
    )

    # TODO(synk): for very large H on v7x (64 MiB VMEM) or for 2-TC layer
    # pipelining, a manual-DMA variant with single-buffered weights would be
    # needed; not required at these sizes.
    grid_spec = pltpu.PrefetchScalarGridSpec(
        num_scalar_prefetch=0,
        grid=(T // tblk,),
        in_specs=[
            pl.BlockSpec((tblk, B, 4 * H), lambda s: (s, 0, 0)),   # gates_x block
            pl.BlockSpec((H, 4 * H), lambda s: (0, 0)),            # W_hh^T (resident)
            pl.BlockSpec((B, H), lambda s: (0, 0)),                # h0
            pl.BlockSpec((B, H), lambda s: (0, 0)),                # c0
        ],
        out_specs=[
            pl.BlockSpec((tblk, B, H), lambda s: (s, 0, 0)),       # y block
            pl.BlockSpec((B, H), lambda s: (0, 0)),                # h_final
            pl.BlockSpec((B, H), lambda s: (0, 0)),                # c_final
        ],
        scratch_shapes=[
            pltpu.VMEM((B, H), jnp.float32),                       # h carry
            pltpu.VMEM((B, H), jnp.float32),                       # c carry
        ],
    )

    y, h_fin, c_fin = pl.pallas_call(
        lstm_recurrence_kernel,
        out_shape=out_shapes,
        grid_spec=grid_spec,
        compiler_params=pltpu.CompilerParams(
            dimension_semantics=("arbitrary",),     # sequential recurrence
            vmem_limit_bytes=32 * 1024 * 1024),
    )(gates_x, whh_t, h0, c0)
    return y, h_fin, c_fin


# ----------------------------- Pure-JAX reference (for sanity check) ----------

def lstm_layer_ref(x, w_ih, w_hh, b_ih, b_hh, h0, c0):
    H = w_hh.shape[1]

    def step(carry, x_t):
        h, c = carry
        gates = x_t @ w_ih.T + b_ih + h @ w_hh.T + b_hh
        i_g = jax.nn.sigmoid(gates[:, 0 * H:1 * H])
        f_g = jax.nn.sigmoid(gates[:, 1 * H:2 * H])
        g_g = jnp.tanh(gates[:, 2 * H:3 * H])
        o_g = jax.nn.sigmoid(gates[:, 3 * H:4 * H])
        c_new = f_g * c + i_g * g_g
        h_new = o_g * jnp.tanh(c_new)
        return (h_new, c_new), h_new

    (hN, cN), ys = lax.scan(step, (h0, c0), x)
    return ys, hN, cN


# ----------------------------- Model (parameters + forward) -------------------

def init_params(key, ntoken, ninp, nhid, nlayers):
    """Deterministic parameter init mirroring RNNModel.__init__ (LSTM branch,
    tie_weights=False, wdrop=0)."""
    keys = jax.random.split(key, 1 + 4 * nlayers)
    initrange = 0.1
    params = {}
    params["encoder"] = jax.random.uniform(
        keys[0], (ntoken, ninp), jnp.float32, -initrange, initrange)

    hid_dim = [nhid for _ in range(nlayers)]  # tie_weights=False

    # chrono biases (forget/input gate bias init) for layers 0 .. nlayers-2
    chrono_bias = [np.zeros(hid_dim[l], np.float32) for l in range(nlayers)]
    half = int(0.5 * hid_dim[0])
    ts1, ts2 = 3.0, 4.0
    chrono_bias[0][:half] = -np.log(np.exp(1.0 / ts1) - 1.0)
    chrono_bias[0][half:] = -np.log(np.exp(1.0 / ts2) - 1.0)
    # TODO(synk): original uses scipy.stats.invgamma.isf(linspace(0,1,1151), a=0.56)
    # timescales for layer 1; substitute a deterministic linspace of timescales
    # to avoid the scipy dependency.
    ts_layer1 = np.linspace(1.5, 20.0, hid_dim[1]).astype(np.float32)
    chrono_bias[1] = (-np.log(np.exp(1.0 / ts_layer1) - 1.0)).astype(np.float32)

    lstm_params = []
    for l in range(nlayers):
        in_sz = ninp if l == 0 else nhid
        hid_sz = hid_dim[l]
        stdv = 1.0 / np.sqrt(hid_sz)  # PyTorch default LSTM init
        k_wih, k_whh, k_bih, k_bhh = keys[1 + 4 * l: 1 + 4 * (l + 1)]
        w_ih = jax.random.uniform(k_wih, (4 * hid_sz, in_sz), jnp.float32, -stdv, stdv)
        w_hh = jax.random.uniform(k_whh, (4 * hid_sz, hid_sz), jnp.float32, -stdv, stdv)
        b_ih = jax.random.uniform(k_bih, (4 * hid_sz,), jnp.float32, -stdv, stdv)
        b_hh = jax.random.uniform(k_bhh, (4 * hid_sz,), jnp.float32, -stdv, stdv)
        if l < nlayers - 1:
            # bias_ih[i,f gates] <- 0 ; bias_hh[i,f gates] <- (-chrono, +chrono)
            b_ih = b_ih.at[0:2 * hid_sz].set(0.0)
            b_hh = b_hh.at[0:2 * hid_sz].set(
                jnp.asarray(np.hstack((-chrono_bias[l], chrono_bias[l])),
                            dtype=jnp.float32))
        lstm_params.append((w_ih, w_hh, b_ih, b_hh))
    params["lstm"] = lstm_params
    # NOTE: the decoder Linear exists in __init__ but is unused by forward().
    return params


def init_hidden(bsz, nhid, nlayers):
    return [(jnp.zeros((1, bsz, nhid), jnp.float32),
             jnp.zeros((1, bsz, nhid), jnp.float32)) for _ in range(nlayers)]


def _forward_impl(params, tokens, hidden, nlayers, partial_output, layer_fn):
    emb = jnp.take(params["encoder"], tokens, axis=0)   # (T, B, ninp); dropouts = identity (eval)
    raw_output = emb
    new_hidden = []
    for l in range(nlayers):
        current_input = raw_output
        if partial_output and l == 2:
            i = partial_output
            current_input = current_input.at[:, :, (i - 1) * 50: i * 50].set(0.0)
        h0, c0 = hidden[l]
        w_ih, w_hh, b_ih, b_hh = params["lstm"][l]
        y, h_fin, c_fin = layer_fn(current_input, w_ih, w_hh, b_ih, b_hh, h0[0], c0[0])
        new_hidden.append((h_fin[None, ...], c_fin[None, ...]))
        raw_output = y                                    # lockdrop = identity (eval)
    output = raw_output                                   # (T, B, nhid)
    result = output.reshape(output.shape[0] * output.shape[1], output.shape[2])
    return result, new_hidden


def rnn_model_forward(params, tokens, hidden, nlayers, partial_output=0):
    """Eval-mode forward pass of RNNModel (LSTM variant), recurrence in Pallas."""
    return _forward_impl(params, tokens, hidden, nlayers, partial_output,
                         lstm_layer_pallas)


def rnn_model_forward_ref(params, tokens, hidden, nlayers, partial_output=0):
    """Pure-JAX reference forward (lax.scan LSTM) for verification."""
    return _forward_impl(params, tokens, hidden, nlayers, partial_output,
                         lstm_layer_ref)


# ----------------------------- main -------------------------------------------

if __name__ == "__main__":
    ntoken, ninp, nhid, nlayers = 50, 32, 32, 3
    seq_len, batch = 8, 2

    key = jax.random.PRNGKey(0)
    k_params, k_tokens = jax.random.split(key)

    params = init_params(k_params, ntoken, ninp, nhid, nlayers)
    tokens = jax.random.randint(k_tokens, (seq_len, batch), 0, ntoken, jnp.int32)
    hidden = init_hidden(batch, nhid, nlayers)

    fwd = jax.jit(functools.partial(rnn_model_forward,
                                    nlayers=nlayers, partial_output=0))
    result, new_hidden = fwd(params, tokens, hidden)

    result = jax.block_until_ready(result)
    for h, c in new_hidden:
        jax.block_until_ready(h)
        jax.block_until_ready(c)

    assert result.shape == (seq_len * batch, nhid)
    assert all(h.shape == (1, batch, nhid) and c.shape == (1, batch, nhid)
               for h, c in new_hidden)
    assert bool(jnp.all(jnp.isfinite(result)))

    # Sanity-check against the pure-JAX f32 reference (kernel uses bf16 MXU
    # operands, so allow a generous elementwise tolerance).
    ref_result, ref_hidden = rnn_model_forward_ref(
        params, tokens, hidden, nlayers=nlayers, partial_output=0)
    ref_result = jax.block_until_ready(ref_result)
    assert bool(jnp.max(jnp.abs(result - ref_result)) < 7e-2)

    print("KERNEL_OK")
</pallas_src>

<mosaic_0001>
module attributes {stable_mosaic.version = 11 : i64} {
  func.func @lstm_recurrence_kernel(%arg0: i32, %arg1: memref<8x2x128xf32, #tpu.memory_space<vmem>>, %arg2: memref<32x128xbf16, #tpu.memory_space<vmem>>, %arg3: memref<2x32xf32, #tpu.memory_space<vmem>>, %arg4: memref<2x32xf32, #tpu.memory_space<vmem>>, %arg5: memref<8x2x32xf32, #tpu.memory_space<vmem>>, %arg6: memref<2x32xf32, #tpu.memory_space<vmem>>, %arg7: memref<2x32xf32, #tpu.memory_space<vmem>>, %arg8: memref<2x32xf32, #tpu.memory_space<vmem>>, %arg9: memref<2x32xf32, #tpu.memory_space<vmem>>) attributes {dimension_semantics = [#tpu.dimension_semantics<arbitrary>], iteration_bounds = array<i64: 1>, scalar_prefetch = 0 : i64, scratch_operands = 2 : i64, tpu.core_type = #tpu.core_type<tc>, window_params = [{transform_indices = @transform_0, window_bounds = array<i64: 8, 2, 128>}, {pipeline_mode = #tpu.pipeline_mode<synchronous>, transform_indices = @transform_1, window_bounds = array<i64: 32, 128>}, {pipeline_mode = #tpu.pipeline_mode<synchronous>, transform_indices = @transform_2, window_bounds = array<i64: 2, 32>}, {pipeline_mode = #tpu.pipeline_mode<synchronous>, transform_indices = @transform_3, window_bounds = array<i64: 2, 32>}, {transform_indices = @transform_4, window_bounds = array<i64: 8, 2, 32>}, {pipeline_mode = #tpu.pipeline_mode<synchronous>, transform_indices = @transform_5, window_bounds = array<i64: 2, 32>}, {pipeline_mode = #tpu.pipeline_mode<synchronous>, transform_indices = @transform_6, window_bounds = array<i64: 2, 32>}]} {
    %c0_i32 = arith.constant 0 : i32
    %0 = arith.cmpi eq, %arg0, %c0_i32 : i32
    %1 = arith.extui %0 : i1 to i32
    %c0_i32_0 = arith.constant 0 : i32
    %2 = arith.cmpi ne, %1, %c0_i32_0 : i32
    scf.if %2 {
      %c0_90 = arith.constant 0 : index
      %c0_91 = arith.constant 0 : index
      %298 = vector.load %arg3[%c0_90, %c0_91] : memref<2x32xf32, #tpu.memory_space<vmem>>, vector<2x32xf32>
      %c0_92 = arith.constant 0 : index
      %c0_93 = arith.constant 0 : index
      %299 = vector.load %arg8[%c0_92, %c0_93] : memref<2x32xf32, #tpu.memory_space<vmem>>, vector<2x32xf32>
      tpu.vector_store %arg8[%c0_92, %c0_93], %298 {strides = array<i32>} : memref<2x32xf32, #tpu.memory_space<vmem>>, vector<2x32xf32>,
      %c0_94 = arith.constant 0 : index
      %c0_95 = arith.constant 0 : index
      %300 = vector.load %arg4[%c0_94, %c0_95] : memref<2x32xf32, #tpu.memory_space<vmem>>, vector<2x32xf32>
      %c0_96 = arith.constant 0 : index
      %c0_97 = arith.constant 0 : index
      %301 = vector.load %arg9[%c0_96, %c0_97] : memref<2x32xf32, #tpu.memory_space<vmem>>, vector<2x32xf32>
      tpu.vector_store %arg9[%c0_96, %c0_97], %300 {strides = array<i32>} : memref<2x32xf32, #tpu.memory_space<vmem>>, vector<2x32xf32>,
    } else {
    }
    %c0 = arith.constant 0 : index
    %c0_1 = arith.constant 0 : index
    %3 = vector.load %arg8[%c0, %c0_1] : memref<2x32xf32, #tpu.memory_space<vmem>>, vector<2x32xf32>
    %c0_2 = arith.constant 0 : index
    %c0_3 = arith.constant 0 : index
    %4 = vector.load %arg9[%c0_2, %c0_3] : memref<2x32xf32, #tpu.memory_space<vmem>>, vector<2x32xf32>
    %c0_i32_4 = arith.constant 0 : i32
    %5 = arith.index_cast %c0_i32_4 : i32 to index
    %c0_5 = arith.constant 0 : index
    %c0_6 = arith.constant 0 : index
    %6 = vector.load %arg1[%5, %c0_5, %c0_6] : memref<8x2x128xf32, #tpu.memory_space<vmem>>, vector<1x2x128xf32>
    %7 = vector.shape_cast %6 : vector<1x2x128xf32> to vector<2x128xf32>
    %8 = arith.truncf %3 : vector<2x32xf32> to vector<2x32xbf16>
    %c0_7 = arith.constant 0 : index
    %c0_8 = arith.constant 0 : index
    %9 = vector.load %arg2[%c0_7, %c0_8] : memref<32x128xbf16, #tpu.memory_space<vmem>>, vector<32x128xbf16>
    %cst = arith.constant dense<0.000000e+00> : vector<2x128xf32>
    %10 = tpu.matmul %8, %9, %cst {dimension_numbers = #tpu.dot_dimension_numbers<[1], [0], [0], [1], [0, 0, 1, 1], [], []>} : vector<2x32xbf16>, vector<32x128xbf16>, vector<2x128xf32> -> vector<2x128xf32>
    %11 = arith.addf %7, %10 : vector<2x128xf32>
    %12 = vector.extract_strided_slice %11 {offsets = [0, 0], sizes = [2, 32], strides = [1, 1]} : vector<2x128xf32> to vector<2x32xf32>
    %13 = arith.negf %12 : vector<2x32xf32>
    %14 = math.exp %13 : vector<2x32xf32>
    %cst_9 = arith.constant 1.000000e+00 : f32
    %15 = vector.broadcast %cst_9 : f32 to vector<2x32xf32>
    %16 = arith.addf %15, %14 : vector<2x32xf32>
    %17 = arith.divf %15, %16 : vector<2x32xf32>
    %18 = vector.extract_strided_slice %11 {offsets = [0, 32], sizes = [2, 32], strides = [1, 1]} : vector<2x128xf32> to vector<2x32xf32>
    %19 = arith.negf %18 : vector<2x32xf32>
    %20 = math.exp %19 : vector<2x32xf32>
    %cst_10 = arith.constant 1.000000e+00 : f32
    %21 = vector.broadcast %cst_10 : f32 to vector<2x32xf32>
    %22 = arith.addf %21, %20 : vector<2x32xf32>
    %23 = arith.divf %21, %22 : vector<2x32xf32>
    %24 = vector.extract_strided_slice %11 {offsets = [0, 64], sizes = [2, 32], strides = [1, 1]} : vector<2x128xf32> to vector<2x32xf32>
    %25 = math.tanh %24 : vector<2x32xf32>
    %26 = vector.extract_strided_slice %11 {offsets = [0, 96], sizes = [2, 32], strides = [1, 1]} : vector<2x128xf32> to vector<2x32xf32>
    %27 = arith.negf %26 : vector<2x32xf32>
    %28 = math.exp %27 : vector<2x32xf32>
    %cst_11 = arith.constant 1.000000e+00 : f32
    %29 = vector.broadcast %cst_11 : f32 to vector<2x32xf32>
    %30 = arith.addf %29, %28 : vector<2x32xf32>
    %31 = arith.divf %29, %30 : vector<2x32xf32>
    %32 = arith.mulf %23, %4 : vector<2x32xf32>
    %33 = arith.mulf %17, %25 : vector<2x32xf32>
    %34 = arith.addf %32, %33 : vector<2x32xf32>
    %35 = math.tanh %34 : vector<2x32xf32>
    %36 = arith.mulf %31, %35 : vector<2x32xf32>
    %37 = arith.index_cast %c0_i32_4 : i32 to index
    %c0_12 = arith.constant 0 : index
    %c0_13 = arith.constant 0 : index
    %38 = vector.load %arg5[%37, %c0_12, %c0_13] : memref<8x2x32xf32, #tpu.memory_space<vmem>>, vector<1x2x32xf32>
    %39 = vector.shape_cast %38 : vector<1x2x32xf32> to vector<2x32xf32>
    %40 = vector.shape_cast %36 : vector<2x32xf32> to vector<1x2x32xf32>
    tpu.vector_store %arg5[%37, %c0_12, %c0_13], %40 {strides = array<i32>} : memref<8x2x32xf32, #tpu.memory_space<vmem>>, vector<1x2x32xf32>,
    %c1_i32 = arith.constant 1 : i32
    %41 = arith.index_cast %c1_i32 : i32 to index
    %c0_14 = arith.constant 0 : index
    %c0_15 = arith.constant 0 : index
    %42 = vector.load %arg1[%41, %c0_14, %c0_15] : memref<8x2x128xf32, #tpu.memory_space<vmem>>, vector<1x2x128xf32>
    %43 = vector.shape_cast %42 : vector<1x2x128xf32> to vector<2x128xf32>
    %44 = arith.truncf %36 : vector<2x32xf32> to vector<2x32xbf16>
    %c0_16 = arith.constant 0 : index
    %c0_17 = arith.constant 0 : index
    %45 = vector.load %arg2[%c0_16, %c0_17] : memref<32x128xbf16, #tpu.memory_space<vmem>>, vector<32x128xbf16>
    %cst_18 = arith.constant dense<0.000000e+00> : vector<2x128xf32>
    %46 = tpu.matmul %44, %45, %cst_18 {dimension_numbers = #tpu.dot_dimension_numbers<[1], [0], [0], [1], [0, 0, 1, 1], [], []>} : vector<2x32xbf16>, vector<32x128xbf16>, vector<2x128xf32> -> vector<2x128xf32>
    %47 = arith.addf %43, %46 : vector<2x128xf32>
    %48 = vector.extract_strided_slice %47 {offsets = [0, 0], sizes = [2, 32], strides = [1, 1]} : vector<2x128xf32> to vector<2x32xf32>
    %49 = arith.negf %48 : vector<2x32xf32>
    %50 = math.exp %49 : vector<2x32xf32>
    %cst_19 = arith.constant 1.000000e+00 : f32
    %51 = vector.broadcast %cst_19 : f32 to vector<2x32xf32>
    %52 = arith.addf %51, %50 : vector<2x32xf32>
    %53 = arith.divf %51, %52 : vector<2x32xf32>
    %54 = vector.extract_strided_slice %47 {offsets = [0, 32], sizes = [2, 32], strides = [1, 1]} : vector<2x128xf32> to vector<2x32xf32>
    %55 = arith.negf %54 : vector<2x32xf32>
    %56 = math.exp %55 : vector<2x32xf32>
    %cst_20 = arith.constant 1.000000e+00 : f32
    %57 = vector.broadcast %cst_20 : f32 to vector<2x32xf32>
    %58 = arith.addf %57, %56 : vector<2x32xf32>
    %59 = arith.divf %57, %58 : vector<2x32xf32>
    %60 = vector.extract_strided_slice %47 {offsets = [0, 64], sizes = [2, 32], strides = [1, 1]} : vector<2x128xf32> to vector<2x32xf32>
    %61 = math.tanh %60 : vector<2x32xf32>
    %62 = vector.extract_strided_slice %47 {offsets = [0, 96], sizes = [2, 32], strides = [1, 1]} : vector<2x128xf32> to vector<2x32xf32>
    %63 = arith.negf %62 : vector<2x32xf32>
    %64 = math.exp %63 : vector<2x32xf32>
    %cst_21 = arith.constant 1.000000e+00 : f32
    %65 = vector.broadcast %cst_21 : f32 to vector<2x32xf32>
    %66 = arith.addf %65, %64 : vector<2x32xf32>
    %67 = arith.divf %65, %66 : vector<2x32xf32>
    %68 = arith.mulf %59, %34 : vector<2x32xf32>
    %69 = arith.mulf %53, %61 : vector<2x32xf32>
    %70 = arith.addf %68, %69 : vector<2x32xf32>
    %71 = math.tanh %70 : vector<2x32xf32>
    %72 = arith.mulf %67, %71 : vector<2x32xf32>
    %73 = arith.index_cast %c1_i32 : i32 to index
    %c0_22 = arith.constant 0 : index
    %c0_23 = arith.constant 0 : index
    %74 = vector.load %arg5[%73, %c0_22, %c0_23] : memref<8x2x32xf32, #tpu.memory_space<vmem>>, vector<1x2x32xf32>
    %75 = vector.shape_cast %74 : vector<1x2x32xf32> to vector<2x32xf32>
    %76 = vector.shape_cast %72 : vector<2x32xf32> to vector<1x2x32xf32>
    tpu.vector_store %arg5[%73, %c0_22, %c0_23], %76 {strides = array<i32>} : memref<8x2x32xf32, #tpu.memory_space<vmem>>, vector<1x2x32xf32>,
    %c2_i32 = arith.constant 2 : i32
    %77 = arith.index_cast %c2_i32 : i32 to index
    %c0_24 = arith.constant 0 : index
    %c0_25 = arith.constant 0 : index
    %78 = vector.load %arg1[%77, %c0_24, %c0_25] : memref<8x2x128xf32, #tpu.memory_space<vmem>>, vector<1x2x128xf32>
    %79 = vector.shape_cast %78 : vector<1x2x128xf32> to vector<2x128xf32>
    %80 = arith.truncf %72 : vector<2x32xf32> to vector<2x32xbf16>
    %c0_26 = arith.constant 0 : index
    %c0_27 = arith.constant 0 : index
    %81 = vector.load %arg2[%c0_26, %c0_27] : memref<32x128xbf16, #tpu.memory_space<vmem>>, vector<32x128xbf16>
    %cst_28 = arith.constant dense<0.000000e+00> : vector<2x128xf32>
    %82 = tpu.matmul %80, %81, %cst_28 {dimension_numbers = #tpu.dot_dimension_numbers<[1], [0], [0], [1], [0, 0, 1, 1], [], []>} : vector<2x32xbf16>, vector<32x128xbf16>, vector<2x128xf32> -> vector<2x128xf32>
    %83 = arith.addf %79, %82 : vector<2x128xf32>
    %84 = vector.extract_strided_slice %83 {offsets = [0, 0], sizes = [2, 32], strides = [1, 1]} : vector<2x128xf32> to vector<2x32xf32>
    %85 = arith.negf %84 : vector<2x32xf32>
    %86 = math.exp %85 : vector<2x32xf32>
    %cst_29 = arith.constant 1.000000e+00 : f32
    %87 = vector.broadcast %cst_29 : f32 to vector<2x32xf32>
    %88 = arith.addf %87, %86 : vector<2x32xf32>
    %89 = arith.divf %87, %88 : vector<2x32xf32>
    %90 = vector.extract_strided_slice %83 {offsets = [0, 32], sizes = [2, 32], strides = [1, 1]} : vector<2x128xf32> to vector<2x32xf32>
    %91 = arith.negf %90 : vector<2x32xf32>
    %92 = math.exp %91 : vector<2x32xf32>
    %cst_30 = arith.constant 1.000000e+00 : f32
    %93 = vector.broadcast %cst_30 : f32 to vector<2x32xf32>
    %94 = arith.addf %93, %92 : vector<2x32xf32>
    %95 = arith.divf %93, %94 : vector<2x32xf32>
    %96 = vector.extract_strided_slice %83 {offsets = [0, 64], sizes = [2, 32], strides = [1, 1]} : vector<2x128xf32> to vector<2x32xf32>
    %97 = math.tanh %96 : vector<2x32xf32>
    %98 = vector.extract_strided_slice %83 {offsets = [0, 96], sizes = [2, 32], strides = [1, 1]} : vector<2x128xf32> to vector<2x32xf32>
    %99 = arith.negf %98 : vector<2x32xf32>
    %100 = math.exp %99 : vector<2x32xf32>
    %cst_31 = arith.constant 1.000000e+00 : f32
    %101 = vector.broadcast %cst_31 : f32 to vector<2x32xf32>
    %102 = arith.addf %101, %100 : vector<2x32xf32>
    %103 = arith.divf %101, %102 : vector<2x32xf32>
    %104 = arith.mulf %95, %70 : vector<2x32xf32>
    %105 = arith.mulf %89, %97 : vector<2x32xf32>
    %106 = arith.addf %104, %105 : vector<2x32xf32>
    %107 = math.tanh %106 : vector<2x32xf32>
    %108 = arith.mulf %103, %107 : vector<2x32xf32>
    %109 = arith.index_cast %c2_i32 : i32 to index
    %c0_32 = arith.constant 0 : index
    %c0_33 = arith.constant 0 : index
    %110 = vector.load %arg5[%109, %c0_32, %c0_33] : memref<8x2x32xf32, #tpu.memory_space<vmem>>, vector<1x2x32xf32>
    %111 = vector.shape_cast %110 : vector<1x2x32xf32> to vector<2x32xf32>
    %112 = vector.shape_cast %108 : vector<2x32xf32> to vector<1x2x32xf32>
    tpu.vector_store %arg5[%109, %c0_32, %c0_33], %112 {strides = array<i32>} : memref<8x2x32xf32, #tpu.memory_space<vmem>>, vector<1x2x32xf32>,
    %c3_i32 = arith.constant 3 : i32
    %113 = arith.index_cast %c3_i32 : i32 to index
    %c0_34 = arith.constant 0 : index
    %c0_35 = arith.constant 0 : index
    %114 = vector.load %arg1[%113, %c0_34, %c0_35] : memref<8x2x128xf32, #tpu.memory_space<vmem>>, vector<1x2x128xf32>
    %115 = vector.shape_cast %114 : vector<1x2x128xf32> to vector<2x128xf32>
    %116 = arith.truncf %108 : vector<2x32xf32> to vector<2x32xbf16>
    %c0_36 = arith.constant 0 : index
    %c0_37 = arith.constant 0 : index
    %117 = vector.load %arg2[%c0_36, %c0_37] : memref<32x128xbf16, #tpu.memory_space<vmem>>, vector<32x128xbf16>
    %cst_38 = arith.constant dense<0.000000e+00> : vector<2x128xf32>
    %118 = tpu.matmul %116, %117, %cst_38 {dimension_numbers = #tpu.dot_dimension_numbers<[1], [0], [0], [1], [0, 0, 1, 1], [], []>} : vector<2x32xbf16>, vector<32x128xbf16>, vector<2x128xf32> -> vector<2x128xf32>
    %119 = arith.addf %115, %118 : vector<2x128xf32>
    %120 = vector.extract_strided_slice %119 {offsets = [0, 0], sizes = [2, 32], strides = [1, 1]} : vector<2x128xf32> to vector<2x32xf32>
    %121 = arith.negf %120 : vector<2x32xf32>
    %122 = math.exp %121 : vector<2x32xf32>
    %cst_39 = arith.constant 1.000000e+00 : f32
    %123 = vector.broadcast %cst_39 : f32 to vector<2x32xf32>
    %124 = arith.addf %123, %122 : vector<2x32xf32>
    %125 = arith.divf %123, %124 : vector<2x32xf32>
    %126 = vector.extract_strided_slice %119 {offsets = [0, 32], sizes = [2, 32], strides = [1, 1]} : vector<2x128xf32> to vector<2x32xf32>
    %127 = arith.negf %126 : vector<2x32xf32>
    %128 = math.exp %127 : vector<2x32xf32>
    %cst_40 = arith.constant 1.000000e+00 : f32
    %129 = vector.broadcast %cst_40 : f32 to vector<2x32xf32>
    %130 = arith.addf %129, %128 : vector<2x32xf32>
    %131 = arith.divf %129, %130 : vector<2x32xf32>
    %132 = vector.extract_strided_slice %119 {offsets = [0, 64], sizes = [2, 32], strides = [1, 1]} : vector<2x128xf32> to vector<2x32xf32>
    %133 = math.tanh %132 : vector<2x32xf32>
    %134 = vector.extract_strided_slice %119 {offsets = [0, 96], sizes = [2, 32], strides = [1, 1]} : vector<2x128xf32> to vector<2x32xf32>
    %135 = arith.negf %134 : vector<2x32xf32>
    %136 = math.exp %135 : vector<2x32xf32>
    %cst_41 = arith.constant 1.000000e+00 : f32
    %137 = vector.broadcast %cst_41 : f32 to vector<2x32xf32>
    %138 = arith.addf %137, %136 : vector<2x32xf32>
    %139 = arith.divf %137, %138 : vector<2x32xf32>
    %140 = arith.mulf %131, %106 : vector<2x32xf32>
    %141 = arith.mulf %125, %133 : vector<2x32xf32>
    %142 = arith.addf %140, %141 : vector<2x32xf32>
    %143 = math.tanh %142 : vector<2x32xf32>
    %144 = arith.mulf %139, %143 : vector<2x32xf32>
    %145 = arith.index_cast %c3_i32 : i32 to index
    %c0_42 = arith.constant 0 : index
    %c0_43 = arith.constant 0 : index
    %146 = vector.load %arg5[%145, %c0_42, %c0_43] : memref<8x2x32xf32, #tpu.memory_space<vmem>>, vector<1x2x32xf32>
    %147 = vector.shape_cast %146 : vector<1x2x32xf32> to vector<2x32xf32>
    %148 = vector.shape_cast %144 : vector<2x32xf32> to vector<1x2x32xf32>
    tpu.vector_store %arg5[%145, %c0_42, %c0_43], %148 {strides = array<i32>} : memref<8x2x32xf32, #tpu.memory_space<vmem>>, vector<1x2x32xf32>,
    %c4_i32 = arith.constant 4 : i32
    %149 = arith.index_cast %c4_i32 : i32 to index
    %c0_44 = arith.constant 0 : index
    %c0_45 = arith.constant 0 : index
    %150 = vector.load %arg1[%149, %c0_44, %c0_45] : memref<8x2x128xf32, #tpu.memory_space<vmem>>, vector<1x2x128xf32>
    %151 = vector.shape_cast %150 : vector<1x2x128xf32> to vector<2x128xf32>
    %152 = arith.truncf %144 : vector<2x32xf32> to vector<2x32xbf16>
    %c0_46 = arith.constant 0 : index
    %c0_47 = arith.constant 0 : index
    %153 = vector.load %arg2[%c0_46, %c0_47] : memref<32x128xbf16, #tpu.memory_space<vmem>>, vector<32x128xbf16>
    %cst_48 = arith.constant dense<0.000000e+00> : vector<2x128xf32>
    %154 = tpu.matmul %152, %153, %cst_48 {dimension_numbers = #tpu.dot_dimension_numbers<[1], [0], [0], [1], [0, 0, 1, 1], [], []>} : vector<2x32xbf16>, vector<32x128xbf16>, vector<2x128xf32> -> vector<2x128xf32>
    %155 = arith.addf %151, %154 : vector<2x128xf32>
    %156 = vector.extract_strided_slice %155 {offsets = [0, 0], sizes = [2, 32], strides = [1, 1]} : vector<2x128xf32> to vector<2x32xf32>
    %157 = arith.negf %156 : vector<2x32xf32>
    %158 = math.exp %157 : vector<2x32xf32>
    %cst_49 = arith.constant 1.000000e+00 : f32
    %159 = vector.broadcast %cst_49 : f32 to vector<2x32xf32>
    %160 = arith.addf %159, %158 : vector<2x32xf32>
    %161 = arith.divf %159, %160 : vector<2x32xf32>
    %162 = vector.extract_strided_slice %155 {offsets = [0, 32], sizes = [2, 32], strides = [1, 1]} : vector<2x128xf32> to vector<2x32xf32>
    %163 = arith.negf %162 : vector<2x32xf32>
    %164 = math.exp %163 : vector<2x32xf32>
    %cst_50 = arith.constant 1.000000e+00 : f32
    %165 = vector.broadcast %cst_50 : f32 to vector<2x32xf32>
    %166 = arith.addf %165, %164 : vector<2x32xf32>
    %167 = arith.divf %165, %166 : vector<2x32xf32>
    %168 = vector.extract_strided_slice %155 {offsets = [0, 64], sizes = [2, 32], strides = [1, 1]} : vector<2x128xf32> to vector<2x32xf32>
    %169 = math.tanh %168 : vector<2x32xf32>
    %170 = vector.extract_strided_slice %155 {offsets = [0, 96], sizes = [2, 32], strides = [1, 1]} : vector<2x128xf32> to vector<2x32xf32>
    %171 = arith.negf %170 : vector<2x32xf32>
    %172 = math.exp %171 : vector<2x32xf32>
    %cst_51 = arith.constant 1.000000e+00 : f32
    %173 = vector.broadcast %cst_51 : f32 to vector<2x32xf32>
    %174 = arith.addf %173, %172 : vector<2x32xf32>
    %175 = arith.divf %173, %174 : vector<2x32xf32>
    %176 = arith.mulf %167, %142 : vector<2x32xf32>
    %177 = arith.mulf %161, %169 : vector<2x32xf32>
    %178 = arith.addf %176, %177 : vector<2x32xf32>
    %179 = math.tanh %178 : vector<2x32xf32>
    %180 = arith.mulf %175, %179 : vector<2x32xf32>
    %181 = arith.index_cast %c4_i32 : i32 to index
    %c0_52 = arith.constant 0 : index
    %c0_53 = arith.constant 0 : index
    %182 = vector.load %arg5[%181, %c0_52, %c0_53] : memref<8x2x32xf32, #tpu.memory_space<vmem>>, vector<1x2x32xf32>
    %183 = vector.shape_cast %182 : vector<1x2x32xf32> to vector<2x32xf32>
    %184 = vector.shape_cast %180 : vector<2x32xf32> to vector<1x2x32xf32>
    tpu.vector_store %arg5[%181, %c0_52, %c0_53], %184 {strides = array<i32>} : memref<8x2x32xf32, #tpu.memory_space<vmem>>, vector<1x2x32xf32>,
    %c5_i32 = arith.constant 5 : i32
    %185 = arith.index_cast %c5_i32 : i32 to index
    %c0_54 = arith.constant 0 : index
    %c0_55 = arith.constant 0 : index
    %186 = vector.load %arg1[%185, %c0_54, %c0_55] : memref<8x2x128xf32, #tpu.memory_space<vmem>>, vector<1x2x128xf32>
    %187 = vector.shape_cast %186 : vector<1x2x128xf32> to vector<2x128xf32>
    %188 = arith.truncf %180 : vector<2x32xf32> to vector<2x32xbf16>
    %c0_56 = arith.constant 0 : index
    %c0_57 = arith.constant 0 : index
    %189 = vector.load %arg2[%c0_56, %c0_57] : memref<32x128xbf16, #tpu.memory_space<vmem>>, vector<32x128xbf16>
    %cst_58 = arith.constant dense<0.000000e+00> : vector<2x128xf32>
    %190 = tpu.matmul %188, %189, %cst_58 {dimension_numbers = #tpu.dot_dimension_numbers<[1], [0], [0], [1], [0, 0, 1, 1], [], []>} : vector<2x32xbf16>, vector<32x128xbf16>, vector<2x128xf32> -> vector<2x128xf32>
    %191 = arith.addf %187, %190 : vector<2x128xf32>
    %192 = vector.extract_strided_slice %191 {offsets = [0, 0], sizes = [2, 32], strides = [1, 1]} : vector<2x128xf32> to vector<2x32xf32>
    %193 = arith.negf %192 : vector<2x32xf32>
    %194 = math.exp %193 : vector<2x32xf32>
    %cst_59 = arith.constant 1.000000e+00 : f32
    %195 = vector.broadcast %cst_59 : f32 to vector<2x32xf32>
    %196 = arith.addf %195, %194 : vector<2x32xf32>
    %197 = arith.divf %195, %196 : vector<2x32xf32>
    %198 = vector.extract_strided_slice %191 {offsets = [0, 32], sizes = [2, 32], strides = [1, 1]} : vector<2x128xf32> to vector<2x32xf32>
    %199 = arith.negf %198 : vector<2x32xf32>
    %200 = math.exp %199 : vector<2x32xf32>
    %cst_60 = arith.constant 1.000000e+00 : f32
    %201 = vector.broadcast %cst_60 : f32 to vector<2x32xf32>
    %202 = arith.addf %201, %200 : vector<2x32xf32>
    %203 = arith.divf %201, %202 : vector<2x32xf32>
    %204 = vector.extract_strided_slice %191 {offsets = [0, 64], sizes = [2, 32], strides = [1, 1]} : vector<2x128xf32> to vector<2x32xf32>
    %205 = math.tanh %204 : vector<2x32xf32>
    %206 = vector.extract_strided_slice %191 {offsets = [0, 96], sizes = [2, 32], strides = [1, 1]} : vector<2x128xf32> to vector<2x32xf32>
    %207 = arith.negf %206 : vector<2x32xf32>
    %208 = math.exp %207 : vector<2x32xf32>
    %cst_61 = arith.constant 1.000000e+00 : f32
    %209 = vector.broadcast %cst_61 : f32 to vector<2x32xf32>
    %210 = arith.addf %209, %208 : vector<2x32xf32>
    %211 = arith.divf %209, %210 : vector<2x32xf32>
    %212 = arith.mulf %203, %178 : vector<2x32xf32>
    %213 = arith.mulf %197, %205 : vector<2x32xf32>
    %214 = arith.addf %212, %213 : vector<2x32xf32>
    %215 = math.tanh %214 : vector<2x32xf32>
    %216 = arith.mulf %211, %215 : vector<2x32xf32>
    %217 = arith.index_cast %c5_i32 : i32 to index
    %c0_62 = arith.constant 0 : index
    %c0_63 = arith.constant 0 : index
    %218 = vector.load %arg5[%217, %c0_62, %c0_63] : memref<8x2x32xf32, #tpu.memory_space<vmem>>, vector<1x2x32xf32>
    %219 = vector.shape_cast %218 : vector<1x2x32xf32> to vector<2x32xf32>
    %220 = vector.shape_cast %216 : vector<2x32xf32> to vector<1x2x32xf32>
    tpu.vector_store %arg5[%217, %c0_62, %c0_63], %220 {strides = array<i32>} : memref<8x2x32xf32, #tpu.memory_space<vmem>>, vector<1x2x32xf32>,
    %c6_i32 = arith.constant 6 : i32
    %221 = arith.index_cast %c6_i32 : i32 to index
    %c0_64 = arith.constant 0 : index
    %c0_65 = arith.constant 0 : index
    %222 = vector.load %arg1[%221, %c0_64, %c0_65] : memref<8x2x128xf32, #tpu.memory_space<vmem>>, vector<1x2x128xf32>
    %223 = vector.shape_cast %222 : vector<1x2x128xf32> to vector<2x128xf32>
    %224 = arith.truncf %216 : vector<2x32xf32> to vector<2x32xbf16>
    %c0_66 = arith.constant 0 : index
    %c0_67 = arith.constant 0 : index
    %225 = vector.load %arg2[%c0_66, %c0_67] : memref<32x128xbf16, #tpu.memory_space<vmem>>, vector<32x128xbf16>
    %cst_68 = arith.constant dense<0.000000e+00> : vector<2x128xf32>
    %226 = tpu.matmul %224, %225, %cst_68 {dimension_numbers = #tpu.dot_dimension_numbers<[1], [0], [0], [1], [0, 0, 1, 1], [], []>} : vector<2x32xbf16>, vector<32x128xbf16>, vector<2x128xf32> -> vector<2x128xf32>
    %227 = arith.addf %223, %226 : vector<2x128xf32>
    %228 = vector.extract_strided_slice %227 {offsets = [0, 0], sizes = [2, 32], strides = [1, 1]} : vector<2x128xf32> to vector<2x32xf32>
    %229 = arith.negf %228 : vector<2x32xf32>
    %230 = math.exp %229 : vector<2x32xf32>
    %cst_69 = arith.constant 1.000000e+00 : f32
    %231 = vector.broadcast %cst_69 : f32 to vector<2x32xf32>
    %232 = arith.addf %231, %230 : vector<2x32xf32>
    %233 = arith.divf %231, %232 : vector<2x32xf32>
    %234 = vector.extract_strided_slice %227 {offsets = [0, 32], sizes = [2, 32], strides = [1, 1]} : vector<2x128xf32> to vector<2x32xf32>
    %235 = arith.negf %234 : vector<2x32xf32>
    %236 = math.exp %235 : vector<2x32xf32>
    %cst_70 = arith.constant 1.000000e+00 : f32
    %237 = vector.broadcast %cst_70 : f32 to vector<2x32xf32>
    %238 = arith.addf %237, %236 : vector<2x32xf32>
    %239 = arith.divf %237, %238 : vector<2x32xf32>
    %240 = vector.extract_strided_slice %227 {offsets = [0, 64], sizes = [2, 32], strides = [1, 1]} : vector<2x128xf32> to vector<2x32xf32>
    %241 = math.tanh %240 : vector<2x32xf32>
    %242 = vector.extract_strided_slice %227 {offsets = [0, 96], sizes = [2, 32], strides = [1, 1]} : vector<2x128xf32> to vector<2x32xf32>
    %243 = arith.negf %242 : vector<2x32xf32>
    %244 = math.exp %243 : vector<2x32xf32>
    %cst_71 = arith.constant 1.000000e+00 : f32
    %245 = vector.broadcast %cst_71 : f32 to vector<2x32xf32>
    %246 = arith.addf %245, %244 : vector<2x32xf32>
    %247 = arith.divf %245, %246 : vector<2x32xf32>
    %248 = arith.mulf %239, %214 : vector<2x32xf32>
    %249 = arith.mulf %233, %241 : vector<2x32xf32>
    %250 = arith.addf %248, %249 : vector<2x32xf32>
    %251 = math.tanh %250 : vector<2x32xf32>
    %252 = arith.mulf %247, %251 : vector<2x32xf32>
    %253 = arith.index_cast %c6_i32 : i32 to index
    %c0_72 = arith.constant 0 : index
    %c0_73 = arith.constant 0 : index
    %254 = vector.load %arg5[%253, %c0_72, %c0_73] : memref<8x2x32xf32, #tpu.memory_space<vmem>>, vector<1x2x32xf32>
    %255 = vector.shape_cast %254 : vector<1x2x32xf32> to vector<2x32xf32>
    %256 = vector.shape_cast %252 : vector<2x32xf32> to vector<1x2x32xf32>
    tpu.vector_store %arg5[%253, %c0_72, %c0_73], %256 {strides = array<i32>} : memref<8x2x32xf32, #tpu.memory_space<vmem>>, vector<1x2x32xf32>,
    %c7_i32 = arith.constant 7 : i32
    %257 = arith.index_cast %c7_i32 : i32 to index
    %c0_74 = arith.constant 0 : index
    %c0_75 = arith.constant 0 : index
    %258 = vector.load %arg1[%257, %c0_74, %c0_75] : memref<8x2x128xf32, #tpu.memory_space<vmem>>, vector<1x2x128xf32>
    %259 = vector.shape_cast %258 : vector<1x2x128xf32> to vector<2x128xf32>
    %260 = arith.truncf %252 : vector<2x32xf32> to vector<2x32xbf16>
    %c0_76 = arith.constant 0 : index
    %c0_77 = arith.constant 0 : index
    %261 = vector.load %arg2[%c0_76, %c0_77] : memref<32x128xbf16, #tpu.memory_space<vmem>>, vector<32x128xbf16>
    %cst_78 = arith.constant dense<0.000000e+00> : vector<2x128xf32>
    %262 = tpu.matmul %260, %261, %cst_78 {dimension_numbers = #tpu.dot_dimension_numbers<[1], [0], [0], [1], [0, 0, 1, 1], [], []>} : vector<2x32xbf16>, vector<32x128xbf16>, vector<2x128xf32> -> vector<2x128xf32>
    %263 = arith.addf %259, %262 : vector<2x128xf32>
    %264 = vector.extract_strided_slice %263 {offsets = [0, 0], sizes = [2, 32], strides = [1, 1]} : vector<2x128xf32> to vector<2x32xf32>
    %265 = arith.negf %264 : vector<2x32xf32>
    %266 = math.exp %265 : vector<2x32xf32>
    %cst_79 = arith.constant 1.000000e+00 : f32
    %267 = vector.broadcast %cst_79 : f32 to vector<2x32xf32>
    %268 = arith.addf %267, %266 : vector<2x32xf32>
    %269 = arith.divf %267, %268 : vector<2x32xf32>
    %270 = vector.extract_strided_slice %263 {offsets = [0, 32], sizes = [2, 32], strides = [1, 1]} : vector<2x128xf32> to vector<2x32xf32>
    %271 = arith.negf %270 : vector<2x32xf32>
    %272 = math.exp %271 : vector<2x32xf32>
    %cst_80 = arith.constant 1.000000e+00 : f32
    %273 = vector.broadcast %cst_80 : f32 to vector<2x32xf32>
    %274 = arith.addf %273, %272 : vector<2x32xf32>
    %275 = arith.divf %273, %274 : vector<2x32xf32>
    %276 = vector.extract_strided_slice %263 {offsets = [0, 64], sizes = [2, 32], strides = [1, 1]} : vector<2x128xf32> to vector<2x32xf32>
    %277 = math.tanh %276 : vector<2x32xf32>
    %278 = vector.extract_strided_slice %263 {offsets = [0, 96], sizes = [2, 32], strides = [1, 1]} : vector<2x128xf32> to vector<2x32xf32>
    %279 = arith.negf %278 : vector<2x32xf32>
    %280 = math.exp %279 : vector<2x32xf32>
    %cst_81 = arith.constant 1.000000e+00 : f32
    %281 = vector.broadcast %cst_81 : f32 to vector<2x32xf32>
    %282 = arith.addf %281, %280 : vector<2x32xf32>
    %283 = arith.divf %281, %282 : vector<2x32xf32>
    %284 = arith.mulf %275, %250 : vector<2x32xf32>
    %285 = arith.mulf %269, %277 : vector<2x32xf32>
    %286 = arith.addf %284, %285 : vector<2x32xf32>
    %287 = math.tanh %286 : vector<2x32xf32>
    %288 = arith.mulf %283, %287 : vector<2x32xf32>
    %289 = arith.index_cast %c7_i32 : i32 to index
    %c0_82 = arith.constant 0 : index
    %c0_83 = arith.constant 0 : index
    %290 = vector.load %arg5[%289, %c0_82, %c0_83] : memref<8x2x32xf32, #tpu.memory_space<vmem>>, vector<1x2x32xf32>
    %291 = vector.shape_cast %290 : vector<1x2x32xf32> to vector<2x32xf32>
    %292 = vector.shape_cast %288 : vector<2x32xf32> to vector<1x2x32xf32>
    tpu.vector_store %arg5[%289, %c0_82, %c0_83], %292 {strides = array<i32>} : memref<8x2x32xf32, #tpu.memory_space<vmem>>, vector<1x2x32xf32>,
    %c8_i32 = arith.constant 8 : i32
    %c0_84 = arith.constant 0 : index
    %c0_85 = arith.constant 0 : index
    %293 = vector.load %arg8[%c0_84, %c0_85] : memref<2x32xf32, #tpu.memory_space<vmem>>, vector<2x32xf32>
    tpu.vector_store %arg8[%c0_84, %c0_85], %288 {strides = array<i32>} : memref<2x32xf32, #tpu.memory_space<vmem>>, vector<2x32xf32>,
    %c0_86 = arith.constant 0 : index
    %c0_87 = arith.constant 0 : index
    %294 = vector.load %arg9[%c0_86, %c0_87] : memref<2x32xf32, #tpu.memory_space<vmem>>, vector<2x32xf32>
    tpu.vector_store %arg9[%c0_86, %c0_87], %286 {strides = array<i32>} : memref<2x32xf32, #tpu.memory_space<vmem>>, vector<2x32xf32>,
    %c0_i32_88 = arith.constant 0 : i32
    %295 = arith.cmpi eq, %arg0, %c0_i32_88 : i32
    %296 = arith.extui %295 : i1 to i32
    %c0_i32_89 = arith.constant 0 : i32
    %297 = arith.cmpi ne, %296, %c0_i32_89 : i32
    scf.if %297 {
      %c0_90 = arith.constant 0 : index
      %c0_91 = arith.constant 0 : index
      %298 = vector.load %arg6[%c0_90, %c0_91] : memref<2x32xf32, #tpu.memory_space<vmem>>, vector<2x32xf32>
      tpu.vector_store %arg6[%c0_90, %c0_91], %288 {strides = array<i32>} : memref<2x32xf32, #tpu.memory_space<vmem>>, vector<2x32xf32>,
      %c0_92 = arith.constant 0 : index
      %c0_93 = arith.constant 0 : index
      %299 = vector.load %arg7[%c0_92, %c0_93] : memref<2x32xf32, #tpu.memory_space<vmem>>, vector<2x32xf32>
      tpu.vector_store %arg7[%c0_92, %c0_93], %286 {strides = array<i32>} : memref<2x32xf32, #tpu.memory_space<vmem>>, vector<2x32xf32>,
    } else {
    }
    return
  }
  func.func @transform_0(%arg0: i32) -> (i32, i32, i32) {
    %c0_i32 = arith.constant 0 : i32
    %c0_i32_0 = arith.constant 0 : i32
    %c0_i32_1 = arith.constant 0 : i32
    return %arg0, %c0_i32, %c0_i32_0 : i32, i32, i32
  }
  func.func @transform_1(%arg0: i32) -> (i32, i32) {
    %c0_i32 = arith.constant 0 : i32
    %c0_i32_0 = arith.constant 0 : i32
    %c0_i32_1 = arith.constant 0 : i32
    return %c0_i32, %c0_i32_0 : i32, i32
  }
  func.func @transform_2(%arg0: i32) -> (i32, i32) {
    %c0_i32 = arith.constant 0 : i32
    %c0_i32_0 = arith.constant 0 : i32
    %c0_i32_1 = arith.constant 0 : i32
    return %c0_i32, %c0_i32_0 : i32, i32
  }
  func.func @transform_3(%arg0: i32) -> (i32, i32) {
    %c0_i32 = arith.constant 0 : i32
    %c0_i32_0 = arith.constant 0 : i32
    %c0_i32_1 = arith.constant 0 : i32
    return %c0_i32, %c0_i32_0 : i32, i32
  }
  func.func @transform_4(%arg0: i32) -> (i32, i32, i32) {
    %c0_i32 = arith.constant 0 : i32
    %c0_i32_0 = arith.constant 0 : i32
    %c0_i32_1 = arith.constant 0 : i32
    return %arg0, %c0_i32, %c0_i32_0 : i32, i32, i32
  }
  func.func @transform_5(%arg0: i32) -> (i32, i32) {
    %c0_i32 = arith.constant 0 : i32
    %c0_i32_0 = arith.constant 0 : i32
    %c0_i32_1 = arith.constant 0 : i32
    return %c0_i32, %c0_i32_0 : i32, i32
  }
  func.func @transform_6(%arg0: i32) -> (i32, i32) {
    %c0_i32 = arith.constant 0 : i32
    %c0_i32_0 = arith.constant 0 : i32
    %c0_i32_1 = arith.constant 0 : i32
    return %c0_i32, %c0_i32_0 : i32, i32
  }
}

module attributes {stable_mosaic.version = 11 : i64} {
  func.func @lstm_recurrence_kernel(%arg0: i32, %arg1: memref<8x2x128xf32, #tpu.memory_space<vmem>>, %arg2: memref<32x128xbf16, #tpu.memory_space<vmem>>, %arg3: memref<2x32xf32, #tpu.memory_space<vmem>>, %arg4: memref<2x32xf32, #tpu.memory_space<vmem>>, %arg5: memref<8x2x32xf32, #tpu.memory_space<vmem>>, %arg6: memref<2x32xf32, #tpu.memory_space<vmem>>, %arg7: memref<2x32xf32, #tpu.memory_space<vmem>>, %arg8: memref<2x32xf32, #tpu.memory_space<vmem>>, %arg9: memref<2x32xf32, #tpu.memory_space<vmem>>) attributes {dimension_semantics = [#tpu.dimension_semantics<arbitrary>], iteration_bounds = array<i64: 1>, scalar_prefetch = 0 : i64, scratch_operands = 2 : i64, tpu.core_type = #tpu.core_type<tc>, window_params = [{transform_indices = @transform_0, window_bounds = array<i64: 8, 2, 128>}, {pipeline_mode = #tpu.pipeline_mode<synchronous>, transform_indices = @transform_1, window_bounds = array<i64: 32, 128>}, {pipeline_mode = #tpu.pipeline_mode<synchronous>, transform_indices = @transform_2, window_bounds = array<i64: 2, 32>}, {pipeline_mode = #tpu.pipeline_mode<synchronous>, transform_indices = @transform_3, window_bounds = array<i64: 2, 32>}, {transform_indices = @transform_4, window_bounds = array<i64: 8, 2, 32>}, {pipeline_mode = #tpu.pipeline_mode<synchronous>, transform_indices = @transform_5, window_bounds = array<i64: 2, 32>}, {pipeline_mode = #tpu.pipeline_mode<synchronous>, transform_indices = @transform_6, window_bounds = array<i64: 2, 32>}]} {
    %c0_i32 = arith.constant 0 : i32
    %0 = arith.cmpi eq, %arg0, %c0_i32 : i32
    %1 = arith.extui %0 : i1 to i32
    %c0_i32_0 = arith.constant 0 : i32
    %2 = arith.cmpi ne, %1, %c0_i32_0 : i32
    scf.if %2 {
      %c0_90 = arith.constant 0 : index
      %c0_91 = arith.constant 0 : index
      %298 = vector.load %arg3[%c0_90, %c0_91] : memref<2x32xf32, #tpu.memory_space<vmem>>, vector<2x32xf32>
      %c0_92 = arith.constant 0 : index
      %c0_93 = arith.constant 0 : index
      %299 = vector.load %arg8[%c0_92, %c0_93] : memref<2x32xf32, #tpu.memory_space<vmem>>, vector<2x32xf32>
      tpu.vector_store %arg8[%c0_92, %c0_93], %298 {strides = array<i32>} : memref<2x32xf32, #tpu.memory_space<vmem>>, vector<2x32xf32>,
      %c0_94 = arith.constant 0 : index
      %c0_95 = arith.constant 0 : index
      %300 = vector.load %arg4[%c0_94, %c0_95] : memref<2x32xf32, #tpu.memory_space<vmem>>, vector<2x32xf32>
      %c0_96 = arith.constant 0 : index
      %c0_97 = arith.constant 0 : index
      %301 = vector.load %arg9[%c0_96, %c0_97] : memref<2x32xf32, #tpu.memory_space<vmem>>, vector<2x32xf32>
      tpu.vector_store %arg9[%c0_96, %c0_97], %300 {strides = array<i32>} : memref<2x32xf32, #tpu.memory_space<vmem>>, vector<2x32xf32>,
    } else {
    }
    %c0 = arith.constant 0 : index
    %c0_1 = arith.constant 0 : index
    %3 = vector.load %arg8[%c0, %c0_1] : memref<2x32xf32, #tpu.memory_space<vmem>>, vector<2x32xf32>
    %c0_2 = arith.constant 0 : index
    %c0_3 = arith.constant 0 : index
    %4 = vector.load %arg9[%c0_2, %c0_3] : memref<2x32xf32, #tpu.memory_space<vmem>>, vector<2x32xf32>
    %c0_i32_4 = arith.constant 0 : i32
    %5 = arith.index_cast %c0_i32_4 : i32 to index
    %c0_5 = arith.constant 0 : index
    %c0_6 = arith.constant 0 : index
    %6 = vector.load %arg1[%5, %c0_5, %c0_6] : memref<8x2x128xf32, #tpu.memory_space<vmem>>, vector<1x2x128xf32>
    %7 = vector.shape_cast %6 : vector<1x2x128xf32> to vector<2x128xf32>
    %8 = arith.truncf %3 : vector<2x32xf32> to vector<2x32xbf16>
    %c0_7 = arith.constant 0 : index
    %c0_8 = arith.constant 0 : index
    %9 = vector.load %arg2[%c0_7, %c0_8] : memref<32x128xbf16, #tpu.memory_space<vmem>>, vector<32x128xbf16>
    %cst = arith.constant dense<0.000000e+00> : vector<2x128xf32>
    %10 = tpu.matmul %8, %9, %cst {dimension_numbers = #tpu.dot_dimension_numbers<[1], [0], [0], [1], [0, 0, 1, 1], [], []>} : vector<2x32xbf16>, vector<32x128xbf16>, vector<2x128xf32> -> vector<2x128xf32>
    %11 = arith.addf %7, %10 : vector<2x128xf32>
    %12 = vector.extract_strided_slice %11 {offsets = [0, 0], sizes = [2, 32], strides = [1, 1]} : vector<2x128xf32> to vector<2x32xf32>
    %13 = arith.negf %12 : vector<2x32xf32>
    %14 = math.exp %13 : vector<2x32xf32>
    %cst_9 = arith.constant 1.000000e+00 : f32
    %15 = vector.broadcast %cst_9 : f32 to vector<2x32xf32>
    %16 = arith.addf %15, %14 : vector<2x32xf32>
    %17 = arith.divf %15, %16 : vector<2x32xf32>
    %18 = vector.extract_strided_slice %11 {offsets = [0, 32], sizes = [2, 32], strides = [1, 1]} : vector<2x128xf32> to vector<2x32xf32>
    %19 = arith.negf %18 : vector<2x32xf32>
    %20 = math.exp %19 : vector<2x32xf32>
    %cst_10 = arith.constant 1.000000e+00 : f32
    %21 = vector.broadcast %cst_10 : f32 to vector<2x32xf32>
    %22 = arith.addf %21, %20 : vector<2x32xf32>
    %23 = arith.divf %21, %22 : vector<2x32xf32>
    %24 = vector.extract_strided_slice %11 {offsets = [0, 64], sizes = [2, 32], strides = [1, 1]} : vector<2x128xf32> to vector<2x32xf32>
    %25 = math.tanh %24 : vector<2x32xf32>
    %26 = vector.extract_strided_slice %11 {offsets = [0, 96], sizes = [2, 32], strides = [1, 1]} : vector<2x128xf32> to vector<2x32xf32>
    %27 = arith.negf %26 : vector<2x32xf32>
    %28 = math.exp %27 : vector<2x32xf32>
    %cst_11 = arith.constant 1.000000e+00 : f32
    %29 = vector.broadcast %cst_11 : f32 to vector<2x32xf32>
    %30 = arith.addf %29, %28 : vector<2x32xf32>
    %31 = arith.divf %29, %30 : vector<2x32xf32>
    %32 = arith.mulf %23, %4 : vector<2x32xf32>
    %33 = arith.mulf %17, %25 : vector<2x32xf32>
    %34 = arith.addf %32, %33 : vector<2x32xf32>
    %35 = math.tanh %34 : vector<2x32xf32>
    %36 = arith.mulf %31, %35 : vector<2x32xf32>
    %37 = arith.index_cast %c0_i32_4 : i32 to index
    %c0_12 = arith.constant 0 : index
    %c0_13 = arith.constant 0 : index
    %38 = vector.load %arg5[%37, %c0_12, %c0_13] : memref<8x2x32xf32, #tpu.memory_space<vmem>>, vector<1x2x32xf32>
    %39 = vector.shape_cast %38 : vector<1x2x32xf32> to vector<2x32xf32>
    %40 = vector.shape_cast %36 : vector<2x32xf32> to vector<1x2x32xf32>
    tpu.vector_store %arg5[%37, %c0_12, %c0_13], %40 {strides = array<i32>} : memref<8x2x32xf32, #tpu.memory_space<vmem>>, vector<1x2x32xf32>,
    %c1_i32 = arith.constant 1 : i32
    %41 = arith.index_cast %c1_i32 : i32 to index
    %c0_14 = arith.constant 0 : index
    %c0_15 = arith.constant 0 : index
    %42 = vector.load %arg1[%41, %c0_14, %c0_15] : memref<8x2x128xf32, #tpu.memory_space<vmem>>, vector<1x2x128xf32>
    %43 = vector.shape_cast %42 : vector<1x2x128xf32> to vector<2x128xf32>
    %44 = arith.truncf %36 : vector<2x32xf32> to vector<2x32xbf16>
    %c0_16 = arith.constant 0 : index
    %c0_17 = arith.constant 0 : index
    %45 = vector.load %arg2[%c0_16, %c0_17] : memref<32x128xbf16, #tpu.memory_space<vmem>>, vector<32x128xbf16>
    %cst_18 = arith.constant dense<0.000000e+00> : vector<2x128xf32>
    %46 = tpu.matmul %44, %45, %cst_18 {dimension_numbers = #tpu.dot_dimension_numbers<[1], [0], [0], [1], [0, 0, 1, 1], [], []>} : vector<2x32xbf16>, vector<32x128xbf16>, vector<2x128xf32> -> vector<2x128xf32>
    %47 = arith.addf %43, %46 : vector<2x128xf32>
    %48 = vector.extract_strided_slice %47 {offsets = [0, 0], sizes = [2, 32], strides = [1, 1]} : vector<2x128xf32> to vector<2x32xf32>
    %49 = arith.negf %48 : vector<2x32xf32>
    %50 = math.exp %49 : vector<2x32xf32>
    %cst_19 = arith.constant 1.000000e+00 : f32
    %51 = vector.broadcast %cst_19 : f32 to vector<2x32xf32>
    %52 = arith.addf %51, %50 : vector<2x32xf32>
    %53 = arith.divf %51, %52 : vector<2x32xf32>
    %54 = vector.extract_strided_slice %47 {offsets = [0, 32], sizes = [2, 32], strides = [1, 1]} : vector<2x128xf32> to vector<2x32xf32>
    %55 = arith.negf %54 : vector<2x32xf32>
    %56 = math.exp %55 : vector<2x32xf32>
    %cst_20 = arith.constant 1.000000e+00 : f32
    %57 = vector.broadcast %cst_20 : f32 to vector<2x32xf32>
    %58 = arith.addf %57, %56 : vector<2x32xf32>
    %59 = arith.divf %57, %58 : vector<2x32xf32>
    %60 = vector.extract_strided_slice %47 {offsets = [0, 64], sizes = [2, 32], strides = [1, 1]} : vector<2x128xf32> to vector<2x32xf32>
    %61 = math.tanh %60 : vector<2x32xf32>
    %62 = vector.extract_strided_slice %47 {offsets = [0, 96], sizes = [2, 32], strides = [1, 1]} : vector<2x128xf32> to vector<2x32xf32>
    %63 = arith.negf %62 : vector<2x32xf32>
    %64 = math.exp %63 : vector<2x32xf32>
    %cst_21 = arith.constant 1.000000e+00 : f32
    %65 = vector.broadcast %cst_21 : f32 to vector<2x32xf32>
    %66 = arith.addf %65, %64 : vector<2x32xf32>
    %67 = arith.divf %65, %66 : vector<2x32xf32>
    %68 = arith.mulf %59, %34 : vector<2x32xf32>
    %69 = arith.mulf %53, %61 : vector<2x32xf32>
    %70 = arith.addf %68, %69 : vector<2x32xf32>
    %71 = math.tanh %70 : vector<2x32xf32>
    %72 = arith.mulf %67, %71 : vector<2x32xf32>
    %73 = arith.index_cast %c1_i32 : i32 to index
    %c0_22 = arith.constant 0 : index
    %c0_23 = arith.constant 0 : index
    %74 = vector.load %arg5[%73, %c0_22, %c0_23] : memref<8x2x32xf32, #tpu.memory_space<vmem>>, vector<1x2x32xf32>
    %75 = vector.shape_cast %74 : vector<1x2x32xf32> to vector<2x32xf32>
    %76 = vector.shape_cast %72 : vector<2x32xf32> to vector<1x2x32xf32>
    tpu.vector_store %arg5[%73, %c0_22, %c0_23], %76 {strides = array<i32>} : memref<8x2x32xf32, #tpu.memory_space<vmem>>, vector<1x2x32xf32>,
    %c2_i32 = arith.constant 2 : i32
    %77 = arith.index_cast %c2_i32 : i32 to index
    %c0_24 = arith.constant 0 : index
    %c0_25 = arith.constant 0 : index
    %78 = vector.load %arg1[%77, %c0_24, %c0_25] : memref<8x2x128xf32, #tpu.memory_space<vmem>>, vector<1x2x128xf32>
    %79 = vector.shape_cast %78 : vector<1x2x128xf32> to vector<2x128xf32>
    %80 = arith.truncf %72 : vector<2x32xf32> to vector<2x32xbf16>
    %c0_26 = arith.constant 0 : index
    %c0_27 = arith.constant 0 : index
    %81 = vector.load %arg2[%c0_26, %c0_27] : memref<32x128xbf16, #tpu.memory_space<vmem>>, vector<32x128xbf16>
    %cst_28 = arith.constant dense<0.000000e+00> : vector<2x128xf32>
    %82 = tpu.matmul %80, %81, %cst_28 {dimension_numbers = #tpu.dot_dimension_numbers<[1], [0], [0], [1], [0, 0, 1, 1], [], []>} : vector<2x32xbf16>, vector<32x128xbf16>, vector<2x128xf32> -> vector<2x128xf32>
    %83 = arith.addf %79, %82 : vector<2x128xf32>
    %84 = vector.extract_strided_slice %83 {offsets = [0, 0], sizes = [2, 32], strides = [1, 1]} : vector<2x128xf32> to vector<2x32xf32>
    %85 = arith.negf %84 : vector<2x32xf32>
    %86 = math.exp %85 : vector<2x32xf32>
    %cst_29 = arith.constant 1.000000e+00 : f32
    %87 = vector.broadcast %cst_29 : f32 to vector<2x32xf32>
    %88 = arith.addf %87, %86 : vector<2x32xf32>
    %89 = arith.divf %87, %88 : vector<2x32xf32>
    %90 = vector.extract_strided_slice %83 {offsets = [0, 32], sizes = [2, 32], strides = [1, 1]} : vector<2x128xf32> to vector<2x32xf32>
    %91 = arith.negf %90 : vector<2x32xf32>
    %92 = math.exp %91 : vector<2x32xf32>
    %cst_30 = arith.constant 1.000000e+00 : f32
    %93 = vector.broadcast %cst_30 : f32 to vector<2x32xf32>
    %94 = arith.addf %93, %92 : vector<2x32xf32>
    %95 = arith.divf %93, %94 : vector<2x32xf32>
    %96 = vector.extract_strided_slice %83 {offsets = [0, 64], sizes = [2, 32], strides = [1, 1]} : vector<2x128xf32> to vector<2x32xf32>
    %97 = math.tanh %96 : vector<2x32xf32>
    %98 = vector.extract_strided_slice %83 {offsets = [0, 96], sizes = [2, 32], strides = [1, 1]} : vector<2x128xf32> to vector<2x32xf32>
    %99 = arith.negf %98 : vector<2x32xf32>
    %100 = math.exp %99 : vector<2x32xf32>
    %cst_31 = arith.constant 1.000000e+00 : f32
    %101 = vector.broadcast %cst_31 : f32 to vector<2x32xf32>
    %102 = arith.addf %101, %100 : vector<2x32xf32>
    %103 = arith.divf %101, %102 : vector<2x32xf32>
    %104 = arith.mulf %95, %70 : vector<2x32xf32>
    %105 = arith.mulf %89, %97 : vector<2x32xf32>
    %106 = arith.addf %104, %105 : vector<2x32xf32>
    %107 = math.tanh %106 : vector<2x32xf32>
    %108 = arith.mulf %103, %107 : vector<2x32xf32>
    %109 = arith.index_cast %c2_i32 : i32 to index
    %c0_32 = arith.constant 0 : index
    %c0_33 = arith.constant 0 : index
    %110 = vector.load %arg5[%109, %c0_32, %c0_33] : memref<8x2x32xf32, #tpu.memory_space<vmem>>, vector<1x2x32xf32>
    %111 = vector.shape_cast %110 : vector<1x2x32xf32> to vector<2x32xf32>
    %112 = vector.shape_cast %108 : vector<2x32xf32> to vector<1x2x32xf32>
    tpu.vector_store %arg5[%109, %c0_32, %c0_33], %112 {strides = array<i32>} : memref<8x2x32xf32, #tpu.memory_space<vmem>>, vector<1x2x32xf32>,
    %c3_i32 = arith.constant 3 : i32
    %113 = arith.index_cast %c3_i32 : i32 to index
    %c0_34 = arith.constant 0 : index
    %c0_35 = arith.constant 0 : index
    %114 = vector.load %arg1[%113, %c0_34, %c0_35] : memref<8x2x128xf32, #tpu.memory_space<vmem>>, vector<1x2x128xf32>
    %115 = vector.shape_cast %114 : vector<1x2x128xf32> to vector<2x128xf32>
    %116 = arith.truncf %108 : vector<2x32xf32> to vector<2x32xbf16>
    %c0_36 = arith.constant 0 : index
    %c0_37 = arith.constant 0 : index
    %117 = vector.load %arg2[%c0_36, %c0_37] : memref<32x128xbf16, #tpu.memory_space<vmem>>, vector<32x128xbf16>
    %cst_38 = arith.constant dense<0.000000e+00> : vector<2x128xf32>
    %118 = tpu.matmul %116, %117, %cst_38 {dimension_numbers = #tpu.dot_dimension_numbers<[1], [0], [0], [1], [0, 0, 1, 1], [], []>} : vector<2x32xbf16>, vector<32x128xbf16>, vector<2x128xf32> -> vector<2x128xf32>
    %119 = arith.addf %115, %118 : vector<2x128xf32>
    %120 = vector.extract_strided_slice %119 {offsets = [0, 0], sizes = [2, 32], strides = [1, 1]} : vector<2x128xf32> to vector<2x32xf32>
    %121 = arith.negf %120 : vector<2x32xf32>
    %122 = math.exp %121 : vector<2x32xf32>
    %cst_39 = arith.constant 1.000000e+00 : f32
    %123 = vector.broadcast %cst_39 : f32 to vector<2x32xf32>
    %124 = arith.addf %123, %122 : vector<2x32xf32>
    %125 = arith.divf %123, %124 : vector<2x32xf32>
    %126 = vector.extract_strided_slice %119 {offsets = [0, 32], sizes = [2, 32], strides = [1, 1]} : vector<2x128xf32> to vector<2x32xf32>
    %127 = arith.negf %126 : vector<2x32xf32>
    %128 = math.exp %127 : vector<2x32xf32>
    %cst_40 = arith.constant 1.000000e+00 : f32
    %129 = vector.broadcast %cst_40 : f32 to vector<2x32xf32>
    %130 = arith.addf %129, %128 : vector<2x32xf32>
    %131 = arith.divf %129, %130 : vector<2x32xf32>
    %132 = vector.extract_strided_slice %119 {offsets = [0, 64], sizes = [2, 32], strides = [1, 1]} : vector<2x128xf32> to vector<2x32xf32>
    %133 = math.tanh %132 : vector<2x32xf32>
    %134 = vector.extract_strided_slice %119 {offsets = [0, 96], sizes = [2, 32], strides = [1, 1]} : vector<2x128xf32> to vector<2x32xf32>
    %135 = arith.negf %134 : vector<2x32xf32>
    %136 = math.exp %135 : vector<2x32xf32>
    %cst_41 = arith.constant 1.000000e+00 : f32
    %137 = vector.broadcast %cst_41 : f32 to vector<2x32xf32>
    %138 = arith.addf %137, %136 : vector<2x32xf32>
    %139 = arith.divf %137, %138 : vector<2x32xf32>
    %140 = arith.mulf %131, %106 : vector<2x32xf32>
    %141 = arith.mulf %125, %133 : vector<2x32xf32>
    %142 = arith.addf %140, %141 : vector<2x32xf32>
    %143 = math.tanh %142 : vector<2x32xf32>
    %144 = arith.mulf %139, %143 : vector<2x32xf32>
    %145 = arith.index_cast %c3_i32 : i32 to index
    %c0_42 = arith.constant 0 : index
    %c0_43 = arith.constant 0 : index
    %146 = vector.load %arg5[%145, %c0_42, %c0_43] : memref<8x2x32xf32, #tpu.memory_space<vmem>>, vector<1x2x32xf32>
    %147 = vector.shape_cast %146 : vector<1x2x32xf32> to vector<2x32xf32>
    %148 = vector.shape_cast %144 : vector<2x32xf32> to vector<1x2x32xf32>
    tpu.vector_store %arg5[%145, %c0_42, %c0_43], %148 {strides = array<i32>} : memref<8x2x32xf32, #tpu.memory_space<vmem>>, vector<1x2x32xf32>,
    %c4_i32 = arith.constant 4 : i32
    %149 = arith.index_cast %c4_i32 : i32 to index
    %c0_44 = arith.constant 0 : index
    %c0_45 = arith.constant 0 : index
    %150 = vector.load %arg1[%149, %c0_44, %c0_45] : memref<8x2x128xf32, #tpu.memory_space<vmem>>, vector<1x2x128xf32>
    %151 = vector.shape_cast %150 : vector<1x2x128xf32> to vector<2x128xf32>
    %152 = arith.truncf %144 : vector<2x32xf32> to vector<2x32xbf16>
    %c0_46 = arith.constant 0 : index
    %c0_47 = arith.constant 0 : index
    %153 = vector.load %arg2[%c0_46, %c0_47] : memref<32x128xbf16, #tpu.memory_space<vmem>>, vector<32x128xbf16>
    %cst_48 = arith.constant dense<0.000000e+00> : vector<2x128xf32>
    %154 = tpu.matmul %152, %153, %cst_48 {dimension_numbers = #tpu.dot_dimension_numbers<[1], [0], [0], [1], [0, 0, 1, 1], [], []>} : vector<2x32xbf16>, vector<32x128xbf16>, vector<2x128xf32> -> vector<2x128xf32>
    %155 = arith.addf %151, %154 : vector<2x128xf32>
    %156 = vector.extract_strided_slice %155 {offsets = [0, 0], sizes = [2, 32], strides = [1, 1]} : vector<2x128xf32> to vector<2x32xf32>
    %157 = arith.negf %156 : vector<2x32xf32>
    %158 = math.exp %157 : vector<2x32xf32>
    %cst_49 = arith.constant 1.000000e+00 : f32
    %159 = vector.broadcast %cst_49 : f32 to vector<2x32xf32>
    %160 = arith.addf %159, %158 : vector<2x32xf32>
    %161 = arith.divf %159, %160 : vector<2x32xf32>
    %162 = vector.extract_strided_slice %155 {offsets = [0, 32], sizes = [2, 32], strides = [1, 1]} : vector<2x128xf32> to vector<2x32xf32>
    %163 = arith.negf %162 : vector<2x32xf32>
    %164 = math.exp %163 : vector<2x32xf32>
    %cst_50 = arith.constant 1.000000e+00 : f32
    %165 = vector.broadcast %cst_50 : f32 to vector<2x32xf32>
    %166 = arith.addf %165, %164 : vector<2x32xf32>
    %167 = arith.divf %165, %166 : vector<2x32xf32>
    %168 = vector.extract_strided_slice %155 {offsets = [0, 64], sizes = [2, 32], strides = [1, 1]} : vector<2x128xf32> to vector<2x32xf32>
    %169 = math.tanh %168 : vector<2x32xf32>
    %170 = vector.extract_strided_slice %155 {offsets = [0, 96], sizes = [2, 32], strides = [1, 1]} : vector<2x128xf32> to vector<2x32xf32>
    %171 = arith.negf %170 : vector<2x32xf32>
    %172 = math.exp %171 : vector<2x32xf32>
    %cst_51 = arith.constant 1.000000e+00 : f32
    %173 = vector.broadcast %cst_51 : f32 to vector<2x32xf32>
    %174 = arith.addf %173, %172 : vector<2x32xf32>
    %175 = arith.divf %173, %174 : vector<2x32xf32>
    %176 = arith.mulf %167, %142 : vector<2x32xf32>
    %177 = arith.mulf %161, %169 : vector<2x32xf32>
    %178 = arith.addf %176, %177 : vector<2x32xf32>
    %179 = math.tanh %178 : vector<2x32xf32>
    %180 = arith.mulf %175, %179 : vector<2x32xf32>
    %181 = arith.index_cast %c4_i32 : i32 to index
    %c0_52 = arith.constant 0 : index
    %c0_53 = arith.constant 0 : index
    %182 = vector.load %arg5[%181, %c0_52, %c0_53] : memref<8x2x32xf32, #tpu.memory_space<vmem>>, vector<1x2x32xf32>
    %183 = vector.shape_cast %182 : vector<1x2x32xf32> to vector<2x32xf32>
    %184 = vector.shape_cast %180 : vector<2x32xf32> to vector<1x2x32xf32>
    tpu.vector_store %arg5[%181, %c0_52, %c0_53], %184 {strides = array<i32>} : memref<8x2x32xf32, #tpu.memory_space<vmem>>, vector<1x2x32xf32>,
    %c5_i32 = arith.constant 5 : i32
    %185 = arith.index_cast %c5_i32 : i32 to index
    %c0_54 = arith.constant 0 : index
    %c0_55 = arith.constant 0 : index
    %186 = vector.load %arg1[%185, %c0_54, %c0_55] : memref<8x2x128xf32, #tpu.memory_space<vmem>>, vector<1x2x128xf32>
    %187 = vector.shape_cast %186 : vector<1x2x128xf32> to vector<2x128xf32>
    %188 = arith.truncf %180 : vector<2x32xf32> to vector<2x32xbf16>
    %c0_56 = arith.constant 0 : index
    %c0_57 = arith.constant 0 : index
    %189 = vector.load %arg2[%c0_56, %c0_57] : memref<32x128xbf16, #tpu.memory_space<vmem>>, vector<32x128xbf16>
    %cst_58 = arith.constant dense<0.000000e+00> : vector<2x128xf32>
    %190 = tpu.matmul %188, %189, %cst_58 {dimension_numbers = #tpu.dot_dimension_numbers<[1], [0], [0], [1], [0, 0, 1, 1], [], []>} : vector<2x32xbf16>, vector<32x128xbf16>, vector<2x128xf32> -> vector<2x128xf32>
    %191 = arith.addf %187, %190 : vector<2x128xf32>
    %192 = vector.extract_strided_slice %191 {offsets = [0, 0], sizes = [2, 32], strides = [1, 1]} : vector<2x128xf32> to vector<2x32xf32>
    %193 = arith.negf %192 : vector<2x32xf32>
    %194 = math.exp %193 : vector<2x32xf32>
    %cst_59 = arith.constant 1.000000e+00 : f32
    %195 = vector.broadcast %cst_59 : f32 to vector<2x32xf32>
    %196 = arith.addf %195, %194 : vector<2x32xf32>
    %197 = arith.divf %195, %196 : vector<2x32xf32>
    %198 = vector.extract_strided_slice %191 {offsets = [0, 32], sizes = [2, 32], strides = [1, 1]} : vector<2x128xf32> to vector<2x32xf32>
    %199 = arith.negf %198 : vector<2x32xf32>
    %200 = math.exp %199 : vector<2x32xf32>
    %cst_60 = arith.constant 1.000000e+00 : f32
    %201 = vector.broadcast %cst_60 : f32 to vector<2x32xf32>
    %202 = arith.addf %201, %200 : vector<2x32xf32>
    %203 = arith.divf %201, %202 : vector<2x32xf32>
    %204 = vector.extract_strided_slice %191 {offsets = [0, 64], sizes = [2, 32], strides = [1, 1]} : vector<2x128xf32> to vector<2x32xf32>
    %205 = math.tanh %204 : vector<2x32xf32>
    %206 = vector.extract_strided_slice %191 {offsets = [0, 96], sizes = [2, 32], strides = [1, 1]} : vector<2x128xf32> to vector<2x32xf32>
    %207 = arith.negf %206 : vector<2x32xf32>
    %208 = math.exp %207 : vector<2x32xf32>
    %cst_61 = arith.constant 1.000000e+00 : f32
    %209 = vector.broadcast %cst_61 : f32 to vector<2x32xf32>
    %210 = arith.addf %209, %208 : vector<2x32xf32>
    %211 = arith.divf %209, %210 : vector<2x32xf32>
    %212 = arith.mulf %203, %178 : vector<2x32xf32>
    %213 = arith.mulf %197, %205 : vector<2x32xf32>
    %214 = arith.addf %212, %213 : vector<2x32xf32>
    %215 = math.tanh %214 : vector<2x32xf32>
    %216 = arith.mulf %211, %215 : vector<2x32xf32>
    %217 = arith.index_cast %c5_i32 : i32 to index
    %c0_62 = arith.constant 0 : index
    %c0_63 = arith.constant 0 : index
    %218 = vector.load %arg5[%217, %c0_62, %c0_63] : memref<8x2x32xf32, #tpu.memory_space<vmem>>, vector<1x2x32xf32>
    %219 = vector.shape_cast %218 : vector<1x2x32xf32> to vector<2x32xf32>
    %220 = vector.shape_cast %216 : vector<2x32xf32> to vector<1x2x32xf32>
    tpu.vector_store %arg5[%217, %c0_62, %c0_63], %220 {strides = array<i32>} : memref<8x2x32xf32, #tpu.memory_space<vmem>>, vector<1x2x32xf32>,
    %c6_i32 = arith.constant 6 : i32
    %221 = arith.index_cast %c6_i32 : i32 to index
    %c0_64 = arith.constant 0 : index
    %c0_65 = arith.constant 0 : index
    %222 = vector.load %arg1[%221, %c0_64, %c0_65] : memref<8x2x128xf32, #tpu.memory_space<vmem>>, vector<1x2x128xf32>
    %223 = vector.shape_cast %222 : vector<1x2x128xf32> to vector<2x128xf32>
    %224 = arith.truncf %216 : vector<2x32xf32> to vector<2x32xbf16>
    %c0_66 = arith.constant 0 : index
    %c0_67 = arith.constant 0 : index
    %225 = vector.load %arg2[%c0_66, %c0_67] : memref<32x128xbf16, #tpu.memory_space<vmem>>, vector<32x128xbf16>
    %cst_68 = arith.constant dense<0.000000e+00> : vector<2x128xf32>
    %226 = tpu.matmul %224, %225, %cst_68 {dimension_numbers = #tpu.dot_dimension_numbers<[1], [0], [0], [1], [0, 0, 1, 1], [], []>} : vector<2x32xbf16>, vector<32x128xbf16>, vector<2x128xf32> -> vector<2x128xf32>
    %227 = arith.addf %223, %226 : vector<2x128xf32>
    %228 = vector.extract_strided_slice %227 {offsets = [0, 0], sizes = [2, 32], strides = [1, 1]} : vector<2x128xf32> to vector<2x32xf32>
    %229 = arith.negf %228 : vector<2x32xf32>
    %230 = math.exp %229 : vector<2x32xf32>
    %cst_69 = arith.constant 1.000000e+00 : f32
    %231 = vector.broadcast %cst_69 : f32 to vector<2x32xf32>
    %232 = arith.addf %231, %230 : vector<2x32xf32>
    %233 = arith.divf %231, %232 : vector<2x32xf32>
    %234 = vector.extract_strided_slice %227 {offsets = [0, 32], sizes = [2, 32], strides = [1, 1]} : vector<2x128xf32> to vector<2x32xf32>
    %235 = arith.negf %234 : vector<2x32xf32>
    %236 = math.exp %235 : vector<2x32xf32>
    %cst_70 = arith.constant 1.000000e+00 : f32
    %237 = vector.broadcast %cst_70 : f32 to vector<2x32xf32>
    %238 = arith.addf %237, %236 : vector<2x32xf32>
    %239 = arith.divf %237, %238 : vector<2x32xf32>
    %240 = vector.extract_strided_slice %227 {offsets = [0, 64], sizes = [2, 32], strides = [1, 1]} : vector<2x128xf32> to vector<2x32xf32>
    %241 = math.tanh %240 : vector<2x32xf32>
    %242 = vector.extract_strided_slice %227 {offsets = [0, 96], sizes = [2, 32], strides = [1, 1]} : vector<2x128xf32> to vector<2x32xf32>
    %243 = arith.negf %242 : vector<2x32xf32>
    %244 = math.exp %243 : vector<2x32xf32>
    %cst_71 = arith.constant 1.000000e+00 : f32
    %245 = vector.broadcast %cst_71 : f32 to vector<2x32xf32>
    %246 = arith.addf %245, %244 : vector<2x32xf32>
    %247 = arith.divf %245, %246 : vector<2x32xf32>
    %248 = arith.mulf %239, %214 : vector<2x32xf32>
    %249 = arith.mulf %233, %241 : vector<2x32xf32>
    %250 = arith.addf %248, %249 : vector<2x32xf32>
    %251 = math.tanh %250 : vector<2x32xf32>
    %252 = arith.mulf %247, %251 : vector<2x32xf32>
    %253 = arith.index_cast %c6_i32 : i32 to index
    %c0_72 = arith.constant 0 : index
    %c0_73 = arith.constant 0 : index
    %254 = vector.load %arg5[%253, %c0_72, %c0_73] : memref<8x2x32xf32, #tpu.memory_space<vmem>>, vector<1x2x32xf32>
    %255 = vector.shape_cast %254 : vector<1x2x32xf32> to vector<2x32xf32>
    %256 = vector.shape_cast %252 : vector<2x32xf32> to vector<1x2x32xf32>
    tpu.vector_store %arg5[%253, %c0_72, %c0_73], %256 {strides = array<i32>} : memref<8x2x32xf32, #tpu.memory_space<vmem>>, vector<1x2x32xf32>,
    %c7_i32 = arith.constant 7 : i32
    %257 = arith.index_cast %c7_i32 : i32 to index
    %c0_74 = arith.constant 0 : index
    %c0_75 = arith.constant 0 : index
    %258 = vector.load %arg1[%257, %c0_74, %c0_75] : memref<8x2x128xf32, #tpu.memory_space<vmem>>, vector<1x2x128xf32>
    %259 = vector.shape_cast %258 : vector<1x2x128xf32> to vector<2x128xf32>
    %260 = arith.truncf %252 : vector<2x32xf32> to vector<2x32xbf16>
    %c0_76 = arith.constant 0 : index
    %c0_77 = arith.constant 0 : index
    %261 = vector.load %arg2[%c0_76, %c0_77] : memref<32x128xbf16, #tpu.memory_space<vmem>>, vector<32x128xbf16>
    %cst_78 = arith.constant dense<0.000000e+00> : vector<2x128xf32>
    %262 = tpu.matmul %260, %261, %cst_78 {dimension_numbers = #tpu.dot_dimension_numbers<[1], [0], [0], [1], [0, 0, 1, 1], [], []>} : vector<2x32xbf16>, vector<32x128xbf16>, vector<2x128xf32> -> vector<2x128xf32>
    %263 = arith.addf %259, %262 : vector<2x128xf32>
    %264 = vector.extract_strided_slice %263 {offsets = [0, 0], sizes = [2, 32], strides = [1, 1]} : vector<2x128xf32> to vector<2x32xf32>
    %265 = arith.negf %264 : vector<2x32xf32>
    %266 = math.exp %265 : vector<2x32xf32>
    %cst_79 = arith.constant 1.000000e+00 : f32
    %267 = vector.broadcast %cst_79 : f32 to vector<2x32xf32>
    %268 = arith.addf %267, %266 : vector<2x32xf32>
    %269 = arith.divf %267, %268 : vector<2x32xf32>
    %270 = vector.extract_strided_slice %263 {offsets = [0, 32], sizes = [2, 32], strides = [1, 1]} : vector<2x128xf32> to vector<2x32xf32>
    %271 = arith.negf %270 : vector<2x32xf32>
    %272 = math.exp %271 : vector<2x32xf32>
    %cst_80 = arith.constant 1.000000e+00 : f32
    %273 = vector.broadcast %cst_80 : f32 to vector<2x32xf32>
    %274 = arith.addf %273, %272 : vector<2x32xf32>
    %275 = arith.divf %273, %274 : vector<2x32xf32>
    %276 = vector.extract_strided_slice %263 {offsets = [0, 64], sizes = [2, 32], strides = [1, 1]} : vector<2x128xf32> to vector<2x32xf32>
    %277 = math.tanh %276 : vector<2x32xf32>
    %278 = vector.extract_strided_slice %263 {offsets = [0, 96], sizes = [2, 32], strides = [1, 1]} : vector<2x128xf32> to vector<2x32xf32>
    %279 = arith.negf %278 : vector<2x32xf32>
    %280 = math.exp %279 : vector<2x32xf32>
    %cst_81 = arith.constant 1.000000e+00 : f32
    %281 = vector.broadcast %cst_81 : f32 to vector<2x32xf32>
    %282 = arith.addf %281, %280 : vector<2x32xf32>
    %283 = arith.divf %281, %282 : vector<2x32xf32>
    %284 = arith.mulf %275, %250 : vector<2x32xf32>
    %285 = arith.mulf %269, %277 : vector<2x32xf32>
    %286 = arith.addf %284, %285 : vector<2x32xf32>
    %287 = math.tanh %286 : vector<2x32xf32>
    %288 = arith.mulf %283, %287 : vector<2x32xf32>
    %289 = arith.index_cast %c7_i32 : i32 to index
    %c0_82 = arith.constant 0 : index
    %c0_83 = arith.constant 0 : index
    %290 = vector.load %arg5[%289, %c0_82, %c0_83] : memref<8x2x32xf32, #tpu.memory_space<vmem>>, vector<1x2x32xf32>
    %291 = vector.shape_cast %290 : vector<1x2x32xf32> to vector<2x32xf32>
    %292 = vector.shape_cast %288 : vector<2x32xf32> to vector<1x2x32xf32>
    tpu.vector_store %arg5[%289, %c0_82, %c0_83], %292 {strides = array<i32>} : memref<8x2x32xf32, #tpu.memory_space<vmem>>, vector<1x2x32xf32>,
    %c8_i32 = arith.constant 8 : i32
    %c0_84 = arith.constant 0 : index
    %c0_85 = arith.constant 0 : index
    %293 = vector.load %arg8[%c0_84, %c0_85] : memref<2x32xf32, #tpu.memory_space<vmem>>, vector<2x32xf32>
    tpu.vector_store %arg8[%c0_84, %c0_85], %288 {strides = array<i32>} : memref<2x32xf32, #tpu.memory_space<vmem>>, vector<2x32xf32>,
    %c0_86 = arith.constant 0 : index
    %c0_87 = arith.constant 0 : index
    %294 = vector.load %arg9[%c0_86, %c0_87] : memref<2x32xf32, #tpu.memory_space<vmem>>, vector<2x32xf32>
    tpu.vector_store %arg9[%c0_86, %c0_87], %286 {strides = array<i32>} : memref<2x32xf32, #tpu.memory_space<vmem>>, vector<2x32xf32>,
    %c0_i32_88 = arith.constant 0 : i32
    %295 = arith.cmpi eq, %arg0, %c0_i32_88 : i32
    %296 = arith.extui %295 : i1 to i32
    %c0_i32_89 = arith.constant 0 : i32
    %297 = arith.cmpi ne, %296, %c0_i32_89 : i32
    scf.if %297 {
      %c0_90 = arith.constant 0 : index
      %c0_91 = arith.constant 0 : index
      %298 = vector.load %arg6[%c0_90, %c0_91] : memref<2x32xf32, #tpu.memory_space<vmem>>, vector<2x32xf32>
      tpu.vector_store %arg6[%c0_90, %c0_91], %288 {strides = array<i32>} : memref<2x32xf32, #tpu.memory_space<vmem>>, vector<2x32xf32>,
      %c0_92 = arith.constant 0 : index
      %c0_93 = arith.constant 0 : index
      %299 = vector.load %arg7[%c0_92, %c0_93] : memref<2x32xf32, #tpu.memory_space<vmem>>, vector<2x32xf32>
      tpu.vector_store %arg7[%c0_92, %c0_93], %286 {strides = array<i32>} : memref<2x32xf32, #tpu.memory_space<vmem>>, vector<2x32xf32>,
    } else {
    }
    return
  }
  func.func @transform_0(%arg0: i32) -> (i32, i32, i32) {
    %c0_i32 = arith.constant 0 : i32
    %c0_i32_0 = arith.constant 0 : i32
    %c0_i32_1 = arith.constant 0 : i32
    return %arg0, %c0_i32, %c0_i32_0 : i32, i32, i32
  }
  func.func @transform_1(%arg0: i32) -> (i32, i32) {
    %c0_i32 = arith.constant 0 : i32
    %c0_i32_0 = arith.constant 0 : i32
    %c0_i32_1 = arith.constant 0 : i32
    return %c0_i32, %c0_i32_0 : i32, i32
  }
  func.func @transform_2(%arg0: i32) -> (i32, i32) {
    %c0_i32 = arith.constant 0 : i32
    %c0_i32_0 = arith.constant 0 : i32
    %c0_i32_1 = arith.constant 0 : i32
    return %c0_i32, %c0_i32_0 : i32, i32
  }
  func.func @transform_3(%arg0: i32) -> (i32, i32) {
    %c0_i32 = arith.constant 0 : i32
    %c0_i32_0 = arith.constant 0 : i32
    %c0_i32_1 = arith.constant 0 : i32
    return %c0_i32, %c0_i32_0 : i32, i32
  }
  func.func @transform_4(%arg0: i32) -> (i32, i32, i32) {
    %c0_i32 = arith.constant 0 : i32
    %c0_i32_0 = arith.constant 0 : i32
    %c0_i32_1 = arith.constant 0 : i32
    return %arg0, %c0_i32, %c0_i32_0 : i32, i32, i32
  }
  func.func @transform_5(%arg0: i32) -> (i32, i32) {
    %c0_i32 = arith.constant 0 : i32
    %c0_i32_0 = arith.constant 0 : i32
    %c0_i32_1 = arith.constant 0 : i32
    return %c0_i32, %c0_i32_0 : i32, i32
  }
  func.func @transform_6(%arg0: i32) -> (i32, i32) {
    %c0_i32 = arith.constant 0 : i32
    %c0_i32_0 = arith.constant 0 : i32
    %c0_i32_1 = arith.constant 0 : i32
    return %c0_i32, %c0_i32_0 : i32, i32
  }
}

</mosaic_0001>

<bundles_post_ra>
// kernel: rnn_model_forward.3
= control target key start
LH: loop header
LB: loop body
LE: loop exit
PB: predicated region body
PF: predicated region fallthrough
CT: control target
= control target key end

     0   :  { %12 = vsyncpa [#allocation5], 0  ;;  %v1111_v1 = vmov 0.0   ;;  %vm1112_vm0 = vmmov 0   ;;  %vm28_vm1 = vcmask 254976   ;;  %vm52_vm2 = vcmask 261120   ;;  %s1385_s0 = inlined_call_operand.vmem [shape: f32[8,2,128], index: 0, kind: input, shape index: {}]   ;;  %s1386_s1 = inlined_call_operand.vmem [shape: bf16[32,128], index: 1, kind: input, shape index: {}]   ;;  %s1387_s2 = inlined_call_operand.vmem [shape: f32[2,32], index: 2, kind: input, shape index: {}]   ;;  %s1388_s3 = inlined_call_operand.vmem [shape: f32[2,32], index: 3, kind: input, shape index: {}]   ;;  %s1389_s4 = inlined_call_operand.vmem [shape: f32[8,2,32], index: 4, kind: output, shape index: {0}]   ;;  %s1390_s5 = inlined_call_operand.hbm [shape: f32[2,32], index: 5, kind: output, shape index: {1}]   ;;  %s1391_s6 = inlined_call_operand.hbm [shape: f32[2,32], index: 6, kind: output, shape index: {2}]  }
   0x1   :  { %v987_v0 = vld [vmem:[%s1386_s1 + $0x8] sm:$0xff]   ;;  %916 = vmatprep.subr.bf16.mxu0 %v1111_v1  ;;  %924 = vmatprep.subr.bf16.mxu1 %v1111_v1  ;;  %v988_v2 = vld [vmem:[%s1386_s1] sm:$0xff]  }
   0x2   :  { %917 = vmatpush3.bf16.msra.mxu0 %v987_v0  ;;  %920 = vmatprep.mubr.msk.bf16.mxu0 %vm1112_vm0, %v1111_v1  ;;  %v27_v3 = vld [vmem:[%s1387_s2] sm:$0x3] }
   0x3   :  { %918 = vmatprep.subr.bf16.mxu0 %v1111_v1  ;;  %29 = vst.msk [vmem:[#allocation2] sm:$0x3] %vm28_vm1, %v27_v3  ;;  %928 = vmatprep.mubr.msk.bf16.mxu1 %vm1112_vm0, %v1111_v1 }
   0x6   :  { %919 = vmatpush3.bf16.msra.mxu0 %v988_v2 }
   0x7   :  { %932 = vmatprep.subr.bf16.mxu0 %v1111_v1 }
   0xa   :  { %v32_v4 = vld [vmem:[#allocation2] sm:$0x3] }
   0xb   :  { %v35_v5 = vpack.c.bf16 %v32_v4, %v32_v4 }
   0xc   :  { %13 = vsyncpa [#allocation7], 0  ;;  %v30_v6 = vld [vmem:[%s1388_s3] sm:$0x3]  ;;  %s1113_s30 = smov 64   ;;  %s1114_s7 = smov 32  }
   0xd   :  { %921 = vmatmul.mubr.msk.bf16.vlgmr.msra.gmra.mxu0 %vm52_vm2, %v35_v5  ;;  %31 = vst.msk [vmem:[#allocation3] sm:$0x3] %vm28_vm1, %v30_v6  ;;  %v34_v7 = vld [vmem:[%s1385_s0] sm:$0x3]  ;;  %v989_v25 = vld [vmem:[%s1386_s1 + $0x8] sm:$0xff]   ;;  %s1115_s28 = smov 96  }
   0xe   :  { %936 = vmatprep.mubr.msk.bf16.mxu0 %vm1112_vm0, %v1111_v1  ;;  %925 = vmatpush3.bf16.msra.mxu1 %v989_v25  ;;  %v990_v26 = vld [vmem:[%s1386_s1] sm:$0xff]   ;;  %v991_v48 = vld [vmem:[%s1386_s1 + $0x8] sm:$0xff]   ;;  %s1116_s29 = smov [#allocation6]  }
   0xf   :  { %926 = vmatprep.subr.bf16.mxu1 %v1111_v1  ;;  %v850_v32 = vld [vmem:[%s1385_s0 + $0x2] sm:$0x3]  ;;  %933 = vmatpush3.bf16.msra.mxu0 %v991_v48  ;;  %v856_v55 = vld [vmem:[%s1385_s0 + $0x4] sm:$0x3]  ;;  %s832_s3 = sshll.u32 %s1116_s29, 4  ;;  %s833_s3 = int_to_ptr.vmem [resolvable:$true] %s832_s3 }
  0x10   :  { %v992_v49 = vld [vmem:[%s1386_s1] sm:$0xff]   ;;  %934 = vmatprep.subr.bf16.mxu0 %v1111_v1  ;;  %p1072_p1 = scmp.lt.s32.totalorder %s833_s3, %s833_s3 }
  0x12   :  { %927 = vmatpush3.bf16.msra.mxu1 %v990_v26 }
  0x13   :  { %940 = vmatprep.subr.bf16.mxu1 %v1111_v1  ;;  %935 = vmatpush3.bf16.msra.mxu0 %v992_v49 }
  0x14   :  { %v33_v14 = vld [vmem:[#allocation3] sm:$0x3]  ;;  %948 = vmatprep.subr.bf16.mxu0 %v1111_v1 }
  0xcd   :  { %v90_v8 = vpop.f32.mrf.mxu0 }
  0xce   :  { %v96_v9 = vadd.f32 %v90_v8, %v34_v7  ;;  %v993_v8 = vld [vmem:[%s1386_s1 + $0x8] sm:$0xff]  }
  0xcf   :  { %v922_v10 = vpop.f32.mrf.mxu0 }
  0xd0   :  { %1003 = vtanh.f32 %v96_v9  ;;  %v849_v15 = vmul.f32 -1.442695, %v96_v9  ;;  %v994_v9 = vld [vmem:[%s1386_s1] sm:$0xff]  }
  0xd1   :  { %v93_v11 = vpop.f32.mrf.mxu0 }
  0xd2   :  { %1005 = vpow2.f32 %v849_v15  ;;  %v862_v15 = vld [vmem:[%s1385_s0 + $0x6] sm:$0x3] }
  0xd3   :  { %v923_v12 = vpop.f32.mrf.mxu0 }
  0xdd   :  { %v1004_v13 = vpop.eup %1003 }
  0xde   :  { %110 = vrot.lane.b32.xlu0 %v1004_v13, %s1113_s30 }
  0xdf   :  { %v1006_v16 = vpop.eup %1005 }
  0xe0   :  { %v100_v17 = vadd.f32 1.0, %v1006_v16 }
  0xe2   :  { %105 = vrot.lane.b32.xlu0 %v33_v14, %s1114_s7  ;;  %1007 = vrcp.f32 %v100_v17 }
  0xef   :  { %v1008_v18 = vpop.eup %1007 }
 0x150   :  { %v111_v19 = vpop.permute.xlu0 %110 }
 0x151   :  { %v113_v20 = vmul.f32 %v1008_v18, %v111_v19 }
 0x153   :  { %115 = vrot.lane.b32.xlu1 %v113_v20, %s1114_s7 }
 0x154   :  { %v106_v21 = vpop.permute.xlu0 %105 }
 0x155   :  { %v108_v22 = vmul.f32 %v1008_v18, %v106_v21 }
 0x1c5   :  { %v116_v23 = vpop.permute.xlu1 %115 }
 0x1c6   :  { %v118_v24 = vadd.f32 %v116_v23, %v108_v22 }
 0x1c8   :  { %1009 = vtanh.f32 %v118_v24 }
 0x1d5   :  { %v1010_v27 = vpop.eup %1009 }
 0x1d6   :  { %121 = vrot.lane.b32.xlu1 %v1010_v27, %s1113_s30 }
 0x248   :  { %v122_v28 = vpop.permute.xlu1 %121 }
 0x249   :  { %v1193_v29 = vmul.f32 %v1008_v18, %v122_v28 }
 0x24b   :  { %v133_v30 = vpack.c.bf16 %v1193_v29, %v1193_v29 }
 0x24d   :  { %139 = vrot.lane.b32.xlu0 %v133_v30, %s1114_s7 }
 0x2bf   :  { %v140_v31 = vpop.permute.xlu0 %139 }
 0x2c0   :  { %929 = vmatmul.mubr.msk.bf16.vlgmr.msra.gmra.mxu1 %vm52_vm2, %v140_v31 }
 0x2c1   :  { %944 = vmatprep.mubr.msk.bf16.mxu1 %vm1112_vm0, %v1111_v1  ;;  %941 = vmatpush3.bf16.msra.mxu1 %v993_v8 }
 0x2c2   :  { %942 = vmatprep.subr.bf16.mxu1 %v1111_v1 }
 0x2c5   :  { %943 = vmatpush3.bf16.msra.mxu1 %v994_v9 }
 0x2c6   :  { %956 = vmatprep.subr.bf16.mxu1 %v1111_v1 }
 0x380   :  { %v190_v33 = vpop.f32.mrf.mxu1 }
 0x381   :  { %v196_v34 = vadd.f32 %v850_v32, %v190_v33  ;;  %v995_v32 = vld [vmem:[%s1386_s1 + $0x8] sm:$0xff]   ;;  %v996_v33 = vld [vmem:[%s1386_s1] sm:$0xff]  }
 0x382   :  { %v930_v35 = vpop.f32.mrf.mxu1 }
 0x383   :  { %1011 = vtanh.f32 %v196_v34  ;;  %v854_v39 = vmul.f32 -1.442695, %v196_v34 }
 0x384   :  { %v193_v36 = vpop.f32.mrf.mxu1 }
 0x385   :  { %1013 = vpow2.f32 %v854_v39  ;;  %v868_v39 = vld [vmem:[%s1385_s0 + $0x8] sm:$0x3] }
 0x386   :  { %v931_v37 = vpop.f32.mrf.mxu1 }
 0x390   :  { %v1012_v38 = vpop.eup %1011 }
 0x391   :  { %206 = vrot.lane.b32.xlu1 %v1012_v38, %s1113_s30 }
 0x392   :  { %v1014_v40 = vpop.eup %1013 }
 0x393   :  { %v200_v41 = vadd.f32 1.0, %v1014_v40 }
 0x395   :  { %1015 = vrcp.f32 %v200_v41 }
 0x3a2   :  { %v1016_v42 = vpop.eup %1015 }
 0x3a3   :  { %v204_v45 = vmul.f32 %v1016_v42, %v118_v24 }
 0x403   :  { %v207_v43 = vpop.permute.xlu1 %206 }
 0x404   :  { %v209_v44 = vmul.f32 %v1016_v42, %v207_v43 }
 0x406   :  { %211 = vrot.lane.b32.xlu0 %v209_v44, %s1114_s7 }
 0x478   :  { %v212_v46 = vpop.permute.xlu0 %211 }
 0x479   :  { %v214_v47 = vadd.f32 %v212_v46, %v204_v45 }
 0x47b   :  { %1017 = vtanh.f32 %v214_v47 }
 0x488   :  { %v1018_v50 = vpop.eup %1017 }
 0x489   :  { %217 = vrot.lane.b32.xlu1 %v1018_v50, %s1113_s30 }
 0x4fb   :  { %v218_v51 = vpop.permute.xlu1 %217 }
 0x4fc   :  { %v1215_v52 = vmul.f32 %v1016_v42, %v218_v51 }
 0x4fe   :  { %v229_v53 = vpack.c.bf16 %v1215_v52, %v1215_v52 }
 0x500   :  { %235 = vrot.lane.b32.xlu0 %v229_v53, %s1114_s7 }
 0x572   :  { %v236_v54 = vpop.permute.xlu0 %235 }
 0x573   :  { %937 = vmatmul.mubr.msk.bf16.vlgmr.msra.gmra.mxu0 %vm52_vm2, %v236_v54 }
 0x574   :  { %952 = vmatprep.mubr.msk.bf16.mxu0 %vm1112_vm0, %v1111_v1  ;;  %949 = vmatpush3.bf16.msra.mxu0 %v995_v32 }
 0x575   :  { %950 = vmatprep.subr.bf16.mxu0 %v1111_v1 }
 0x578   :  { %951 = vmatpush3.bf16.msra.mxu0 %v996_v33 }
 0x579   :  { %964 = vmatprep.subr.bf16.mxu0 %v1111_v1 }
 0x633   :  { %v286_v56 = vpop.f32.mrf.mxu0 }
 0x634   :  { %v292_v57 = vadd.f32 %v856_v55, %v286_v56  ;;  %v997_v56 = vld [vmem:[%s1386_s1 + $0x8] sm:$0xff]  }
 0x635   :  { %v938_v58 = vpop.f32.mrf.mxu0 }
 0x636   :  { %1019 = vtanh.f32 %v292_v57  ;;  %v860_v62 = vmul.f32 -1.442695, %v292_v57  ;;  %v998_v57 = vld [vmem:[%s1386_s1] sm:$0xff]  }
 0x637   :  { %v289_v59 = vpop.f32.mrf.mxu0 }
 0x638   :  { %1021 = vpow2.f32 %v860_v62 }
 0x639   :  { %v939_v60 = vpop.f32.mrf.mxu0 }
 0x643   :  { %v1020_v61 = vpop.eup %1019 }
 0x644   :  { %302 = vrot.lane.b32.xlu1 %v1020_v61, %s1113_s30 }
 0x645   :  { %v1022_v63 = vpop.eup %1021 }
 0x646   :  { %v296_v0 = vadd.f32 1.0, %v1022_v63  ;;  %v874_v63 = vld [vmem:[%s1385_s0 + $0xa] sm:$0x3] }
 0x648   :  { %1023 = vrcp.f32 %v296_v0 }
 0x655   :  { %v1024_v2 = vpop.eup %1023 }
 0x656   :  { %v300_v5 = vmul.f32 %v1024_v2, %v214_v47 }
 0x6b6   :  { %v303_v3 = vpop.permute.xlu1 %302 }
 0x6b7   :  { %v305_v4 = vmul.f32 %v1024_v2, %v303_v3 }
 0x6b9   :  { %307 = vrot.lane.b32.xlu0 %v305_v4, %s1114_s7 }
 0x72b   :  { %v308_v6 = vpop.permute.xlu0 %307 }
 0x72c   :  { %v310_v7 = vadd.f32 %v308_v6, %v300_v5 }
 0x72e   :  { %1025 = vtanh.f32 %v310_v7 }
 0x73b   :  { %v1026_v10 = vpop.eup %1025 }
 0x73c   :  { %313 = vrot.lane.b32.xlu1 %v1026_v10, %s1113_s30 }
 0x7ae   :  { %v314_v11 = vpop.permute.xlu1 %313 }
 0x7af   :  { %v1237_v12 = vmul.f32 %v1024_v2, %v314_v11 }
 0x7b1   :  { %v325_v13 = vpack.c.bf16 %v1237_v12, %v1237_v12 }
 0x7b3   :  { %331 = vrot.lane.b32.xlu0 %v325_v13, %s1114_s7 }
 0x825   :  { %v332_v14 = vpop.permute.xlu0 %331 }
 0x826   :  { %945 = vmatmul.mubr.msk.bf16.vlgmr.msra.gmra.mxu1 %vm52_vm2, %v332_v14 }
 0x827   :  { %960 = vmatprep.mubr.msk.bf16.mxu1 %vm1112_vm0, %v1111_v1  ;;  %957 = vmatpush3.bf16.msra.mxu1 %v997_v56 }
 0x828   :  { %958 = vmatprep.subr.bf16.mxu1 %v1111_v1 }
 0x82b   :  { %959 = vmatpush3.bf16.msra.mxu1 %v998_v57 }
 0x82c   :  { %972 = vmatprep.subr.bf16.mxu1 %v1111_v1 }
 0x8e6   :  { %v382_v16 = vpop.f32.mrf.mxu1 }
 0x8e7   :  { %v388_v17 = vadd.f32 %v862_v15, %v382_v16 }
 0x8e8   :  { %v946_v18 = vpop.f32.mrf.mxu1 }
 0x8e9   :  { %1027 = vtanh.f32 %v388_v17  ;;  %v866_v22 = vmul.f32 -1.442695, %v388_v17  ;;  %v999_v17 = vld [vmem:[%s1386_s1 + $0x8] sm:$0xff]   ;;  %v1000_v18 = vld [vmem:[%s1386_s1] sm:$0xff]  }
 0x8ea   :  { %v385_v19 = vpop.f32.mrf.mxu1 }
 0x8eb   :  { %1029 = vpow2.f32 %v866_v22 }
 0x8ec   :  { %v947_v20 = vpop.f32.mrf.mxu1 }
 0x8f6   :  { %v1028_v21 = vpop.eup %1027 }
 0x8f7   :  { %398 = vrot.lane.b32.xlu1 %v1028_v21, %s1113_s30 }
 0x8f8   :  { %v1030_v23 = vpop.eup %1029 }
 0x8f9   :  { %v392_v24 = vadd.f32 1.0, %v1030_v23 }
 0x8fb   :  { %1031 = vrcp.f32 %v392_v24  ;;  %v880_v24 = vld [vmem:[%s1385_s0 + $0xc] sm:$0x3] }
 0x908   :  { %v1032_v25 = vpop.eup %1031 }
 0x909   :  { %v396_v28 = vmul.f32 %v1032_v25, %v310_v7 }
 0x969   :  { %v399_v26 = vpop.permute.xlu1 %398 }
 0x96a   :  { %v401_v27 = vmul.f32 %v1032_v25, %v399_v26 }
 0x96c   :  { %403 = vrot.lane.b32.xlu0 %v401_v27, %s1114_s7 }
 0x9de   :  { %v404_v30 = vpop.permute.xlu0 %403 }
 0x9df   :  { %v406_v31 = vadd.f32 %v404_v30, %v396_v28 }
 0x9e1   :  { %1033 = vtanh.f32 %v406_v31 }
 0x9ee   :  { %v1034_v34 = vpop.eup %1033 }
 0x9ef   :  { %409 = vrot.lane.b32.xlu1 %v1034_v34, %s1113_s30 }
 0xa61   :  { %v410_v35 = vpop.permute.xlu1 %409 }
 0xa62   :  { %v1259_v36 = vmul.f32 %v1032_v25, %v410_v35 }
 0xa64   :  { %v421_v37 = vpack.c.bf16 %v1259_v36, %v1259_v36 }
 0xa66   :  { %427 = vrot.lane.b32.xlu0 %v421_v37, %s1114_s7 }
 0xad8   :  { %v428_v38 = vpop.permute.xlu0 %427 }
 0xad9   :  { %953 = vmatmul.mubr.msk.bf16.vlgmr.msra.gmra.mxu0 %vm52_vm2, %v428_v38 }
 0xada   :  { %968 = vmatprep.mubr.msk.bf16.mxu0 %vm1112_vm0, %v1111_v1  ;;  %965 = vmatpush3.bf16.msra.mxu0 %v999_v17 }
 0xadb   :  { %966 = vmatprep.subr.bf16.mxu0 %v1111_v1 }
 0xade   :  { %967 = vmatpush3.bf16.msra.mxu0 %v1000_v18 }
 0xb99   :  { %v478_v40 = vpop.f32.mrf.mxu0 }
 0xb9a   :  { %v484_v41 = vadd.f32 %v868_v39, %v478_v40 }
 0xb9b   :  { %v954_v42 = vpop.f32.mrf.mxu0 }
 0xb9c   :  { %1035 = vtanh.f32 %v484_v41  ;;  %v872_v46 = vmul.f32 -1.442695, %v484_v41  ;;  %v1001_v42 = vld [vmem:[%s1386_s1 + $0x8] sm:$0xff]  }
 0xb9d   :  { %v481_v43 = vpop.f32.mrf.mxu0 }
 0xb9e   :  { %1037 = vpow2.f32 %v872_v46  ;;  %v1002_v43 = vld [vmem:[%s1386_s1] sm:$0xff]  }
 0xb9f   :  { %v955_v44 = vpop.f32.mrf.mxu0 }
 0xba9   :  { %v1036_v45 = vpop.eup %1035 }
 0xbaa   :  { %494 = vrot.lane.b32.xlu1 %v1036_v45, %s1113_s30 }
 0xbab   :  { %v1038_v47 = vpop.eup %1037 }
 0xbac   :  { %v488_v48 = vadd.f32 1.0, %v1038_v47 }
 0xbae   :  { %1039 = vrcp.f32 %v488_v48 }
 0xbbb   :  { %v1040_v49 = vpop.eup %1039 }
 0xbbc   :  { %v492_v53 = vmul.f32 %v1040_v49, %v406_v31 }
 0xc1c   :  { %v495_v50 = vpop.permute.xlu1 %494 }
 0xc1d   :  { %v497_v51 = vmul.f32 %v1040_v49, %v495_v50 }
 0xc1f   :  { %499 = vrot.lane.b32.xlu0 %v497_v51, %s1114_s7 }
 0xc91   :  { %v500_v54 = vpop.permute.xlu0 %499 }
 0xc92   :  { %v502_v55 = vadd.f32 %v500_v54, %v492_v53 }
 0xc94   :  { %1041 = vtanh.f32 %v502_v55 }
 0xca1   :  { %v1042_v58 = vpop.eup %1041 }
 0xca2   :  { %505 = vrot.lane.b32.xlu1 %v1042_v58, %s1113_s30 }
 0xd14   :  { %v506_v59 = vpop.permute.xlu1 %505 }
 0xd15   :  { %v1281_v60 = vmul.f32 %v1040_v49, %v506_v59  ;;  %v886_v49 = vld [vmem:[%s1385_s0 + $0xe] sm:$0x3] }
 0xd17   :  { %v517_v61 = vpack.c.bf16 %v1281_v60, %v1281_v60 }
 0xd19   :  { %523 = vrot.lane.b32.xlu0 %v517_v61, %s1114_s7 }
 0xd8b   :  { %v524_v62 = vpop.permute.xlu0 %523 }
 0xd8c   :  { %961 = vmatmul.mubr.msk.bf16.vlgmr.msra.gmra.mxu1 %vm52_vm2, %v524_v62 }
 0xd8d   :  { %976 = vmatprep.mubr.msk.bf16.mxu1 %vm1112_vm0, %v1111_v1  ;;  %973 = vmatpush3.bf16.msra.mxu1 %v1001_v42 }
 0xd8e   :  { %974 = vmatprep.subr.bf16.mxu1 %v1111_v1 }
 0xd91   :  { %975 = vmatpush3.bf16.msra.mxu1 %v1002_v43 }
 0xe4c   :  { %v574_v0 = vpop.f32.mrf.mxu1 }
 0xe4d   :  { %v580_v2 = vadd.f32 %v874_v63, %v574_v0 }
 0xe4e   :  { %v962_v3 = vpop.f32.mrf.mxu1 }
 0xe4f   :  { %1043 = vtanh.f32 %v580_v2  ;;  %v878_v7 = vmul.f32 -1.442695, %v580_v2 }
 0xe50   :  { %v577_v4 = vpop.f32.mrf.mxu1 }
 0xe51   :  { %1045 = vpow2.f32 %v878_v7 }
 0xe52   :  { %v963_v5 = vpop.f32.mrf.mxu1 }
 0xe5c   :  { %v1044_v6 = vpop.eup %1043 }
 0xe5d   :  { %590 = vrot.lane.b32.xlu1 %v1044_v6, %s1113_s30 }
 0xe5e   :  { %v1046_v8 = vpop.eup %1045 }
 0xe5f   :  { %v584_v9 = vadd.f32 1.0, %v1046_v8 }
 0xe61   :  { %1047 = vrcp.f32 %v584_v9 }
 0xe6e   :  { %v1048_v10 = vpop.eup %1047 }
 0xe6f   :  { %v588_v14 = vmul.f32 %v1048_v10, %v502_v55 }
 0xecf   :  { %v591_v11 = vpop.permute.xlu1 %590 }
 0xed0   :  { %v593_v13 = vmul.f32 %v1048_v10, %v591_v11 }
 0xed2   :  { %595 = vrot.lane.b32.xlu0 %v593_v13, %s1114_s7 }
 0xf44   :  { %v596_v15 = vpop.permute.xlu0 %595 }
 0xf45   :  { %v598_v16 = vadd.f32 %v596_v15, %v588_v14 }
 0xf47   :  { %1049 = vtanh.f32 %v598_v16 }
 0xf54   :  { %v1050_v19 = vpop.eup %1049 }
 0xf55   :  { %601 = vrot.lane.b32.xlu1 %v1050_v19, %s1113_s30 }
 0xfc7   :  { %v602_v20 = vpop.permute.xlu1 %601 }
 0xfc8   :  { %v1302_v21 = vmul.f32 %v1048_v10, %v602_v20 }
 0xfca   :  { %v613_v22 = vpack.c.bf16 %v1302_v21, %v1302_v21 }
 0xfcc   :  { %619 = vrot.lane.b32.xlu0 %v613_v22, %s1114_s7 }
0x103e   :  { %v620_v23 = vpop.permute.xlu0 %619 }
0x103f   :  { %969 = vmatmul.mubr.msk.bf16.vlgmr.msra.gmra.mxu0 %vm52_vm2, %v620_v23 }
0x10ff   :  { %v670_v25 = vpop.f32.mrf.mxu0 }
0x1100   :  { %v676_v26 = vadd.f32 %v880_v24, %v670_v25 }
0x1101   :  { %v970_v27 = vpop.f32.mrf.mxu0 }
0x1102   :  { %1051 = vtanh.f32 %v676_v26  ;;  %v884_v32 = vmul.f32 -1.442695, %v676_v26 }
0x1103   :  { %v673_v28 = vpop.f32.mrf.mxu0 }
0x1104   :  { %1053 = vpow2.f32 %v884_v32 }
0x1105   :  { %v971_v30 = vpop.f32.mrf.mxu0 }
0x110f   :  { %v1052_v31 = vpop.eup %1051 }
0x1110   :  { %686 = vrot.lane.b32.xlu1 %v1052_v31, %s1113_s30 }
0x1111   :  { %v1054_v33 = vpop.eup %1053 }
0x1112   :  { %v680_v34 = vadd.f32 1.0, %v1054_v33 }
0x1114   :  { %1055 = vrcp.f32 %v680_v34 }
0x1121   :  { %v1056_v35 = vpop.eup %1055 }
0x1122   :  { %v684_v39 = vmul.f32 %v1056_v35, %v598_v16 }
0x1182   :  { %v687_v37 = vpop.permute.xlu1 %686 }
0x1183   :  { %v689_v38 = vmul.f32 %v1056_v35, %v687_v37 }
0x1185   :  { %691 = vrot.lane.b32.xlu0 %v689_v38, %s1114_s7 }
0x11f7   :  { %v692_v40 = vpop.permute.xlu0 %691 }
0x11f8   :  { %v694_v41 = vadd.f32 %v692_v40, %v684_v39 }
0x11fa   :  { %1057 = vtanh.f32 %v694_v41 }
0x1207   :  { %v1058_v44 = vpop.eup %1057 }
0x1208   :  { %697 = vrot.lane.b32.xlu1 %v1058_v44, %s1113_s30 }
0x127a   :  { %v698_v45 = vpop.permute.xlu1 %697 }
0x127b   :  { %v700_v46 = vmul.f32 %v1056_v35, %v698_v45 }
0x127d   :  { %v709_v47 = vpack.c.bf16 %v700_v46, %v700_v46 }
0x127f   :  { %715 = vrot.lane.b32.xlu0 %v709_v47, %s1114_s7 }
0x12f1   :  { %v716_v48 = vpop.permute.xlu0 %715 }
0x12f2   :  { %977 = vmatmul.mubr.msk.bf16.vlgmr.msra.gmra.mxu1 %vm52_vm2, %v716_v48 }
0x13b2   :  { %v766_v50 = vpop.f32.mrf.mxu1 }
0x13b3   :  { %v772_v51 = vadd.f32 %v886_v49, %v766_v50 }
0x13b4   :  { %v978_v53 = vpop.f32.mrf.mxu1 }
0x13b5   :  { %1059 = vtanh.f32 %v772_v51  ;;  %v890_v56 = vmul.f32 -1.442695, %v772_v51 }
0x13b6   :  { %v769_v1 = vpop.f32.mrf.mxu1 }
0x13b7   :  { %1061 = vpow2.f32 %v890_v56 }
0x13b8   :  { %v979_v54 = vpop.f32.mrf.mxu1 }
0x13c2   :  { %v1060_v55 = vpop.eup %1059 }
0x13c3   :  { %782 = vrot.lane.b32.xlu1 %v1060_v55, %s1113_s30 }
0x13c4   :  { %v1062_v57 = vpop.eup %1061 }
0x13c5   :  { %v776_v58 = vadd.f32 1.0, %v1062_v57 }
0x13c7   :  { %1063 = vrcp.f32 %v776_v58 }
0x13d4   :  { %v1064_v59 = vpop.eup %1063 }
0x13d5   :  { %v780_v63 = vmul.f32 %v1064_v59, %v694_v41 }
0x1435   :  { %v783_v61 = vpop.permute.xlu1 %782 }
0x1436   :  { %v785_v62 = vmul.f32 %v1064_v59, %v783_v61 }
0x1438   :  { %787 = vrot.lane.b32.xlu0 %v785_v62, %s1114_s7 }
0x143c   :  { %126 = vrot.lane.b32.xlu0 %v1193_v29, %s1114_s7 }
0x1440   :  { %318 = vrot.lane.b32.xlu0 %v1237_v12, %s1114_s7 }
0x1444   :  { %510 = vrot.lane.b32.xlu0 %v1281_v60, %s1114_s7 }
0x14aa   :  { %v788_v0 = vpop.permute.xlu0 %787 }
0x14ab   :  { %v790_v2 = vadd.f32 %v788_v0, %v780_v63 }
0x14ad   :  { %1065 = vtanh.f32 %v790_v2 }
0x14ae   :  { %v127_v3 = vpop.permute.xlu0 %126 }
0x14af   :  { %130 = vst.msk [vmem:[%s1389_s4] sm:$0x3] %vm28_vm1, %v127_v3 }
0x14b2   :  { %v319_v4 = vpop.permute.xlu0 %318 }
0x14b3   :  { %861 = vst.msk [vmem:[%s1389_s4 + $0x4] sm:$0x3] %vm28_vm1, %v319_v4 }
0x14b6   :  { %v511_v29 = vpop.permute.xlu0 %510 }
0x14b7   :  { %873 = vst.msk [vmem:[%s1389_s4 + $0x8] sm:$0x3] %vm28_vm1, %v511_v29 }
0x14ba   :  { %v1066_v12 = vpop.eup %1065 }
0x14bb   :  { %793 = vrot.lane.b32.xlu1 %v1066_v12, %s1113_s30  ;;  %s1067_s30 = scalar_lea.vmem %s833_s3, 32 }
0x14bc   :  { %p1068_p0 = scmp.ne.s32.totalorder %s833_s3, %s1067_s30  ;;  %p1073_p2 = scmp.lt.s32.totalorder %s1067_s30, %s1067_s30 }
0x14be   :  { %p1074_p3 = por %p1073_p2, %p1072_p1 }
0x14bf   :  { %805 = vrot.lane.b32.xlu1 %v790_v2, %s1115_s28 }
0x14c0   :  { %p1075_p4 = pnand %p1074_p3, %p1068_p0 }
0x14c3   :  { %222 = vrot.lane.b32.xlu1 %v1215_v52, %s1114_s7 }
0x14c7   :  { %414 = vrot.lane.b32.xlu1 %v1259_v36, %s1114_s7 }
0x14cb   :  { %606 = vrot.lane.b32.xlu1 %v1302_v21, %s1114_s7 }
0x152d   :  { %v794_v60 = vpop.permute.xlu1 %793 }
0x152e   :  { %v796_v5 = vmul.f32 %v1064_v59, %v794_v60 }
0x1530   :  { %798 = vrot.lane.b32.xlu0 %v796_v5, %s1114_s7 }
0x1531   :  { %v806_v6 = vpop.permute.xlu1 %805 }
0x1532   :  { %808 = vst.msk [vmem:[#allocation3] sm:$0x3] %vm28_vm1, %v806_v6  ;;  %813 = vst.msk [vmem:[#allocation6] sm:$0x3] %vm28_vm1, %v806_v6 }
0x1533   :  { %1078 = shalt.err (!%p1075_p4)
}
0x1534   :  { %835 = dma.vmem_to_hbm [thread:$0]  %s833_s3, 32, %s1391_s6, [#allocation7]   ;;  %702 = vrot.lane.b32.xlu0 %v700_v46, %s1114_s7 }
0x1535   :  { %v223_v52 = vpop.permute.xlu1 %222  ;;  %s1117_s6 = smov [#allocation4]  }
0x1536   :  { %855 = vst.msk [vmem:[%s1389_s4 + $0x2] sm:$0x3] %vm28_vm1, %v223_v52  ;;  %s822_s7 = sshll.u32 %s1117_s6, 4  ;;  %s823_s7 = int_to_ptr.vmem [resolvable:$true] %s822_s7 }
0x1537   :  { %s1087_s18 = scalar_lea.vmem %s823_s7, 32  ;;  %p1092_p6 = scmp.lt.s32.totalorder %s823_s7, %s823_s7 }
0x1538   :  { %p1088_p5 = scmp.ne.s32.totalorder %s823_s7, %s1087_s18  ;;  %p1093_p7 = scmp.lt.s32.totalorder %s1087_s18, %s1087_s18 }
0x1539   :  { %v415_v36 = vpop.permute.xlu1 %414 }
0x153a   :  { %867 = vst.msk [vmem:[%s1389_s4 + $0x6] sm:$0x3] %vm28_vm1, %v415_v36  ;;  %p1094_p8 = por %p1093_p7, %p1092_p6 }
0x153c   :  { %p1095_p9 = pnand %p1094_p8, %p1088_p5 }
0x153d   :  { %v607_v7 = vpop.permute.xlu1 %606 }
0x153e   :  { %879 = vst.msk [vmem:[%s1389_s4 + $0xa] sm:$0x3] %vm28_vm1, %v607_v7 }
0x15a2   :  { %v799_v8 = vpop.permute.xlu0 %798 }
0x15a3   :  { %891 = vst.msk [vmem:[%s1389_s4 + $0xe] sm:$0x3] %vm28_vm1, %v799_v8  ;;  %803 = vst.msk [vmem:[#allocation2] sm:$0x3] %vm28_vm1, %v799_v8 }
0x15a4   :  { %812 = vst.msk [vmem:[#allocation4] sm:$0x3] %vm28_vm1, %v799_v8 }
0x15a5   :  { %1098 = shalt.err (!%p1095_p9)
}
0x15a6   :  { %825 = dma.vmem_to_hbm [thread:$0]  %s823_s7, 32, %s1390_s5, [#allocation5]   ;;  %v703_v9 = vpop.permute.xlu0 %702 }
0x15a7   :  { %885 = vst.msk [vmem:[%s1389_s4 + $0xc] sm:$0x3] %vm28_vm1, %v703_v9 }
0x15a8   :  { %1107 = dma.done.wait [#allocation5], 32  }
0x15a9   :  { %1108 = vsyncadd [#allocation5], 4294967264 }
0x15aa   :  { %1109 = dma.done.wait [#allocation7], 32  }
0x15ab   :  { %1110 = vsyncadd [#allocation7], 4294967264 }
0x15ac   :  { %844 = vsyncpa [#allocation5], 1 }
0x15ad   :  { %845 = vsyncpa [#allocation7], 1 }

// kernel: rnn_model_forward.5
= control target key start
LH: loop header
LB: loop body
LE: loop exit
PB: predicated region body
PF: predicated region fallthrough
CT: control target
= control target key end

     0   :  { %12 = vsyncpa [#allocation5], 0  ;;  %v1137_v1 = vmov 0.0   ;;  %vm1138_vm0 = vmmov 0   ;;  %vm28_vm1 = vcmask 254976   ;;  %vm52_vm2 = vcmask 261120   ;;  %s1389_s0 = inlined_call_operand.vmem [shape: f32[8,2,128], index: 0, kind: input, shape index: {}]   ;;  %s1390_s1 = inlined_call_operand.vmem [shape: bf16[32,128], index: 1, kind: input, shape index: {}]   ;;  %s1391_s2 = inlined_call_operand.vmem [shape: f32[2,32], index: 2, kind: input, shape index: {}]   ;;  %s1392_s3 = inlined_call_operand.vmem [shape: f32[2,32], index: 3, kind: input, shape index: {}]   ;;  %s1393_s4 = inlined_call_operand.hbm [shape: f32[8,2,32], index: 4, kind: output, shape index: {0}]   ;;  %s1394_s5 = inlined_call_operand.hbm [shape: f32[2,32], index: 5, kind: output, shape index: {1}]   ;;  %s1395_s6 = inlined_call_operand.hbm [shape: f32[2,32], index: 6, kind: output, shape index: {2}]  }
   0x1   :  { %v993_v0 = vld [vmem:[%s1390_s1 + $0x8] sm:$0xff]   ;;  %920 = vmatprep.subr.bf16.mxu0 %v1137_v1  ;;  %928 = vmatprep.subr.bf16.mxu1 %v1137_v1  ;;  %v994_v2 = vld [vmem:[%s1390_s1] sm:$0xff]  }
   0x2   :  { %921 = vmatpush3.bf16.msra.mxu0 %v993_v0  ;;  %924 = vmatprep.mubr.msk.bf16.mxu0 %vm1138_vm0, %v1137_v1  ;;  %v27_v3 = vld [vmem:[%s1391_s2] sm:$0x3] }
   0x3   :  { %922 = vmatprep.subr.bf16.mxu0 %v1137_v1  ;;  %29 = vst.msk [vmem:[#allocation2] sm:$0x3] %vm28_vm1, %v27_v3  ;;  %932 = vmatprep.mubr.msk.bf16.mxu1 %vm1138_vm0, %v1137_v1 }
   0x6   :  { %923 = vmatpush3.bf16.msra.mxu0 %v994_v2 }
   0x7   :  { %936 = vmatprep.subr.bf16.mxu0 %v1137_v1 }
   0xa   :  { %v32_v4 = vld [vmem:[#allocation2] sm:$0x3] }
   0xb   :  { %v35_v5 = vpack.c.bf16 %v32_v4, %v32_v4 }
   0xc   :  { %13 = vsyncpa [#allocation7], 0  ;;  %v30_v6 = vld [vmem:[%s1392_s3] sm:$0x3]  ;;  %s1139_s30 = smov 64   ;;  %s1140_s7 = smov 32  }
   0xd   :  { %925 = vmatmul.mubr.msk.bf16.vlgmr.msra.gmra.mxu0 %vm52_vm2, %v35_v5  ;;  %31 = vst.msk [vmem:[#allocation3] sm:$0x3] %vm28_vm1, %v30_v6  ;;  %v34_v7 = vld [vmem:[%s1389_s0] sm:$0x3]  ;;  %v995_v25 = vld [vmem:[%s1390_s1 + $0x8] sm:$0xff]   ;;  %s1143_s25 = smov [#allocation4]  }
   0xe   :  { %940 = vmatprep.mubr.msk.bf16.mxu0 %vm1138_vm0, %v1137_v1  ;;  %929 = vmatpush3.bf16.msra.mxu1 %v995_v25  ;;  %v996_v26 = vld [vmem:[%s1390_s1] sm:$0xff]   ;;  %v997_v48 = vld [vmem:[%s1390_s1 + $0x8] sm:$0xff]   ;;  %s819_s26 = sshll.u32 %s1143_s25, 4  ;;  %s1144_s2 = smov [#allocation8]   ;;  %s820_s26 = int_to_ptr.vmem [resolvable:$true] %s819_s26 }
   0xf   :  { %930 = vmatprep.subr.bf16.mxu1 %v1137_v1  ;;  %v861_v32 = vld [vmem:[%s1389_s0 + $0x2] sm:$0x3]  ;;  %937 = vmatpush3.bf16.msra.mxu0 %v997_v48  ;;  %v866_v55 = vld [vmem:[%s1389_s0 + $0x4] sm:$0x3]  ;;  %s842_s27 = sshll.u32 %s1144_s2, 4  ;;  %s843_s27 = int_to_ptr.vmem [resolvable:$true] %s842_s27 }
  0x10   :  { %v998_v49 = vld [vmem:[%s1390_s1] sm:$0xff]   ;;  %938 = vmatprep.subr.bf16.mxu0 %v1137_v1 }
  0x12   :  { %931 = vmatpush3.bf16.msra.mxu1 %v996_v26 }
  0x13   :  { %944 = vmatprep.subr.bf16.mxu1 %v1137_v1  ;;  %939 = vmatpush3.bf16.msra.mxu0 %v998_v49 }
  0x14   :  { %v33_v14 = vld [vmem:[#allocation3] sm:$0x3]  ;;  %952 = vmatprep.subr.bf16.mxu0 %v1137_v1 }
  0xcd   :  { %v90_v8 = vpop.f32.mrf.mxu0 }
  0xce   :  { %v96_v9 = vadd.f32 %v90_v8, %v34_v7  ;;  %v999_v8 = vld [vmem:[%s1390_s1 + $0x8] sm:$0xff]  }
  0xcf   :  { %v926_v10 = vpop.f32.mrf.mxu0 }
  0xd0   :  { %1009 = vtanh.f32 %v96_v9  ;;  %v860_v15 = vmul.f32 -1.442695, %v96_v9  ;;  %v1000_v9 = vld [vmem:[%s1390_s1] sm:$0xff]  }
  0xd1   :  { %v93_v11 = vpop.f32.mrf.mxu0 }
  0xd2   :  { %1011 = vpow2.f32 %v860_v15  ;;  %v871_v15 = vld [vmem:[%s1389_s0 + $0x6] sm:$0x3] }
  0xd3   :  { %v927_v12 = vpop.f32.mrf.mxu0 }
  0xdd   :  { %v1010_v13 = vpop.eup %1009 }
  0xde   :  { %110 = vrot.lane.b32.xlu0 %v1010_v13, %s1139_s30 }
  0xdf   :  { %v1012_v16 = vpop.eup %1011 }
  0xe0   :  { %v100_v17 = vadd.f32 1.0, %v1012_v16 }
  0xe2   :  { %105 = vrot.lane.b32.xlu0 %v33_v14, %s1140_s7  ;;  %1013 = vrcp.f32 %v100_v17 }
  0xef   :  { %v1014_v18 = vpop.eup %1013 }
 0x150   :  { %v111_v19 = vpop.permute.xlu0 %110 }
 0x151   :  { %v113_v20 = vmul.f32 %v1014_v18, %v111_v19 }
 0x153   :  { %115 = vrot.lane.b32.xlu1 %v113_v20, %s1140_s7 }
 0x154   :  { %v106_v21 = vpop.permute.xlu0 %105 }
 0x155   :  { %v108_v22 = vmul.f32 %v1014_v18, %v106_v21 }
 0x1c5   :  { %v116_v23 = vpop.permute.xlu1 %115 }
 0x1c6   :  { %v118_v24 = vadd.f32 %v116_v23, %v108_v22 }
 0x1c8   :  { %1015 = vtanh.f32 %v118_v24 }
 0x1d5   :  { %v1016_v27 = vpop.eup %1015 }
 0x1d6   :  { %121 = vrot.lane.b32.xlu1 %v1016_v27, %s1139_s30 }
 0x248   :  { %v122_v28 = vpop.permute.xlu1 %121 }
 0x249   :  { %v1221_v29 = vmul.f32 %v1014_v18, %v122_v28 }
 0x24b   :  { %v133_v30 = vpack.c.bf16 %v1221_v29, %v1221_v29 }
 0x24d   :  { %139 = vrot.lane.b32.xlu0 %v133_v30, %s1140_s7 }
 0x2bf   :  { %v140_v31 = vpop.permute.xlu0 %139 }
 0x2c0   :  { %933 = vmatmul.mubr.msk.bf16.vlgmr.msra.gmra.mxu1 %vm52_vm2, %v140_v31 }
 0x2c1   :  { %948 = vmatprep.mubr.msk.bf16.mxu1 %vm1138_vm0, %v1137_v1  ;;  %945 = vmatpush3.bf16.msra.mxu1 %v999_v8 }
 0x2c2   :  { %946 = vmatprep.subr.bf16.mxu1 %v1137_v1 }
 0x2c5   :  { %947 = vmatpush3.bf16.msra.mxu1 %v1000_v9 }
 0x2c6   :  { %960 = vmatprep.subr.bf16.mxu1 %v1137_v1 }
 0x380   :  { %v190_v33 = vpop.f32.mrf.mxu1 }
 0x381   :  { %v196_v34 = vadd.f32 %v861_v32, %v190_v33  ;;  %v1001_v32 = vld [vmem:[%s1390_s1 + $0x8] sm:$0xff]   ;;  %v1002_v33 = vld [vmem:[%s1390_s1] sm:$0xff]  }
 0x382   :  { %v934_v35 = vpop.f32.mrf.mxu1 }
 0x383   :  { %1017 = vtanh.f32 %v196_v34  ;;  %v865_v39 = vmul.f32 -1.442695, %v196_v34 }
 0x384   :  { %v193_v36 = vpop.f32.mrf.mxu1 }
 0x385   :  { %1019 = vpow2.f32 %v865_v39  ;;  %v876_v39 = vld [vmem:[%s1389_s0 + $0x8] sm:$0x3] }
 0x386   :  { %v935_v37 = vpop.f32.mrf.mxu1 }
 0x390   :  { %v1018_v38 = vpop.eup %1017 }
 0x391   :  { %206 = vrot.lane.b32.xlu1 %v1018_v38, %s1139_s30 }
 0x392   :  { %v1020_v40 = vpop.eup %1019 }
 0x393   :  { %v200_v41 = vadd.f32 1.0, %v1020_v40 }
 0x395   :  { %1021 = vrcp.f32 %v200_v41 }
 0x3a2   :  { %v1022_v42 = vpop.eup %1021 }
 0x3a3   :  { %v204_v45 = vmul.f32 %v1022_v42, %v118_v24 }
 0x403   :  { %v207_v43 = vpop.permute.xlu1 %206 }
 0x404   :  { %v209_v44 = vmul.f32 %v1022_v42, %v207_v43 }
 0x406   :  { %211 = vrot.lane.b32.xlu0 %v209_v44, %s1140_s7 }
 0x478   :  { %v212_v46 = vpop.permute.xlu0 %211 }
 0x479   :  { %v214_v47 = vadd.f32 %v212_v46, %v204_v45 }
 0x47b   :  { %1023 = vtanh.f32 %v214_v47 }
 0x488   :  { %v1024_v50 = vpop.eup %1023 }
 0x489   :  { %217 = vrot.lane.b32.xlu1 %v1024_v50, %s1139_s30 }
 0x4fb   :  { %v218_v51 = vpop.permute.xlu1 %217 }
 0x4fc   :  { %v1243_v52 = vmul.f32 %v1022_v42, %v218_v51 }
 0x4fe   :  { %v229_v53 = vpack.c.bf16 %v1243_v52, %v1243_v52 }
 0x500   :  { %235 = vrot.lane.b32.xlu0 %v229_v53, %s1140_s7 }
 0x572   :  { %v236_v54 = vpop.permute.xlu0 %235 }
 0x573   :  { %941 = vmatmul.mubr.msk.bf16.vlgmr.msra.gmra.mxu0 %vm52_vm2, %v236_v54 }
 0x574   :  { %956 = vmatprep.mubr.msk.bf16.mxu0 %vm1138_vm0, %v1137_v1  ;;  %953 = vmatpush3.bf16.msra.mxu0 %v1001_v32 }
 0x575   :  { %954 = vmatprep.subr.bf16.mxu0 %v1137_v1 }
 0x578   :  { %955 = vmatpush3.bf16.msra.mxu0 %v1002_v33 }
 0x579   :  { %968 = vmatprep.subr.bf16.mxu0 %v1137_v1 }
 0x633   :  { %v286_v56 = vpop.f32.mrf.mxu0 }
 0x634   :  { %v292_v57 = vadd.f32 %v866_v55, %v286_v56  ;;  %v1003_v56 = vld [vmem:[%s1390_s1 + $0x8] sm:$0xff]  }
 0x635   :  { %v942_v58 = vpop.f32.mrf.mxu0 }
 0x636   :  { %1025 = vtanh.f32 %v292_v57  ;;  %v870_v62 = vmul.f32 -1.442695, %v292_v57  ;;  %v1004_v57 = vld [vmem:[%s1390_s1] sm:$0xff]  }
 0x637   :  { %v289_v59 = vpop.f32.mrf.mxu0 }
 0x638   :  { %1027 = vpow2.f32 %v870_v62 }
 0x639   :  { %v943_v60 = vpop.f32.mrf.mxu0 }
 0x643   :  { %v1026_v61 = vpop.eup %1025 }
 0x644   :  { %302 = vrot.lane.b32.xlu1 %v1026_v61, %s1139_s30 }
 0x645   :  { %v1028_v63 = vpop.eup %1027 }
 0x646   :  { %v296_v0 = vadd.f32 1.0, %v1028_v63  ;;  %v881_v63 = vld [vmem:[%s1389_s0 + $0xa] sm:$0x3] }
 0x648   :  { %1029 = vrcp.f32 %v296_v0 }
 0x655   :  { %v1030_v2 = vpop.eup %1029 }
 0x656   :  { %v300_v5 = vmul.f32 %v1030_v2, %v214_v47 }
 0x6b6   :  { %v303_v3 = vpop.permute.xlu1 %302 }
 0x6b7   :  { %v305_v4 = vmul.f32 %v1030_v2, %v303_v3 }
 0x6b9   :  { %307 = vrot.lane.b32.xlu0 %v305_v4, %s1140_s7 }
 0x72b   :  { %v308_v6 = vpop.permute.xlu0 %307 }
 0x72c   :  { %v310_v7 = vadd.f32 %v308_v6, %v300_v5 }
 0x72e   :  { %1031 = vtanh.f32 %v310_v7 }
 0x73b   :  { %v1032_v10 = vpop.eup %1031 }
 0x73c   :  { %313 = vrot.lane.b32.xlu1 %v1032_v10, %s1139_s30 }
 0x7ae   :  { %v314_v11 = vpop.permute.xlu1 %313 }
 0x7af   :  { %v1265_v12 = vmul.f32 %v1030_v2, %v314_v11 }
 0x7b1   :  { %v325_v13 = vpack.c.bf16 %v1265_v12, %v1265_v12 }
 0x7b3   :  { %331 = vrot.lane.b32.xlu0 %v325_v13, %s1140_s7 }
 0x825   :  { %v332_v14 = vpop.permute.xlu0 %331 }
 0x826   :  { %949 = vmatmul.mubr.msk.bf16.vlgmr.msra.gmra.mxu1 %vm52_vm2, %v332_v14 }
 0x827   :  { %964 = vmatprep.mubr.msk.bf16.mxu1 %vm1138_vm0, %v1137_v1  ;;  %961 = vmatpush3.bf16.msra.mxu1 %v1003_v56 }
 0x828   :  { %962 = vmatprep.subr.bf16.mxu1 %v1137_v1 }
 0x82b   :  { %963 = vmatpush3.bf16.msra.mxu1 %v1004_v57 }
 0x82c   :  { %976 = vmatprep.subr.bf16.mxu1 %v1137_v1 }
 0x8e6   :  { %v382_v16 = vpop.f32.mrf.mxu1 }
 0x8e7   :  { %v388_v17 = vadd.f32 %v871_v15, %v382_v16 }
 0x8e8   :  { %v950_v18 = vpop.f32.mrf.mxu1 }
 0x8e9   :  { %1033 = vtanh.f32 %v388_v17  ;;  %v875_v22 = vmul.f32 -1.442695, %v388_v17  ;;  %v1005_v17 = vld [vmem:[%s1390_s1 + $0x8] sm:$0xff]   ;;  %v1006_v18 = vld [vmem:[%s1390_s1] sm:$0xff]  }
 0x8ea   :  { %v385_v19 = vpop.f32.mrf.mxu1 }
 0x8eb   :  { %1035 = vpow2.f32 %v875_v22 }
 0x8ec   :  { %v951_v20 = vpop.f32.mrf.mxu1 }
 0x8f6   :  { %v1034_v21 = vpop.eup %1033 }
 0x8f7   :  { %398 = vrot.lane.b32.xlu1 %v1034_v21, %s1139_s30 }
 0x8f8   :  { %v1036_v23 = vpop.eup %1035 }
 0x8f9   :  { %v392_v24 = vadd.f32 1.0, %v1036_v23 }
 0x8fb   :  { %1037 = vrcp.f32 %v392_v24  ;;  %v886_v24 = vld [vmem:[%s1389_s0 + $0xc] sm:$0x3] }
 0x908   :  { %v1038_v25 = vpop.eup %1037 }
 0x909   :  { %v396_v28 = vmul.f32 %v1038_v25, %v310_v7 }
 0x969   :  { %v399_v26 = vpop.permute.xlu1 %398 }
 0x96a   :  { %v401_v27 = vmul.f32 %v1038_v25, %v399_v26 }
 0x96c   :  { %403 = vrot.lane.b32.xlu0 %v401_v27, %s1140_s7 }
 0x9de   :  { %v404_v30 = vpop.permute.xlu0 %403 }
 0x9df   :  { %v406_v31 = vadd.f32 %v404_v30, %v396_v28 }
 0x9e1   :  { %1039 = vtanh.f32 %v406_v31 }
 0x9ee   :  { %v1040_v34 = vpop.eup %1039 }
 0x9ef   :  { %409 = vrot.lane.b32.xlu1 %v1040_v34, %s1139_s30 }
 0xa61   :  { %v410_v35 = vpop.permute.xlu1 %409 }
 0xa62   :  { %v1287_v36 = vmul.f32 %v1038_v25, %v410_v35 }
 0xa64   :  { %v421_v37 = vpack.c.bf16 %v1287_v36, %v1287_v36 }
 0xa66   :  { %427 = vrot.lane.b32.xlu0 %v421_v37, %s1140_s7 }
 0xad8   :  { %v428_v38 = vpop.permute.xlu0 %427 }
 0xad9   :  { %957 = vmatmul.mubr.msk.bf16.vlgmr.msra.gmra.mxu0 %vm52_vm2, %v428_v38 }
 0xada   :  { %972 = vmatprep.mubr.msk.bf16.mxu0 %vm1138_vm0, %v1137_v1  ;;  %969 = vmatpush3.bf16.msra.mxu0 %v1005_v17 }
 0xadb   :  { %970 = vmatprep.subr.bf16.mxu0 %v1137_v1 }
 0xade   :  { %971 = vmatpush3.bf16.msra.mxu0 %v1006_v18 }
 0xb99   :  { %v478_v40 = vpop.f32.mrf.mxu0 }
 0xb9a   :  { %v484_v41 = vadd.f32 %v876_v39, %v478_v40 }
 0xb9b   :  { %v958_v42 = vpop.f32.mrf.mxu0 }
 0xb9c   :  { %1041 = vtanh.f32 %v484_v41  ;;  %v880_v46 = vmul.f32 -1.442695, %v484_v41  ;;  %v1007_v42 = vld [vmem:[%s1390_s1 + $0x8] sm:$0xff]  }
 0xb9d   :  { %v481_v43 = vpop.f32.mrf.mxu0 }
 0xb9e   :  { %1043 = vpow2.f32 %v880_v46  ;;  %v1008_v43 = vld [vmem:[%s1390_s1] sm:$0xff]   ;;  %s1142_s1 = smov [#allocation6]  }
 0xb9f   :  { %v959_v44 = vpop.f32.mrf.mxu0 }
 0xba9   :  { %v1042_v45 = vpop.eup %1041 }
 0xbaa   :  { %494 = vrot.lane.b32.xlu1 %v1042_v45, %s1139_s30 }
 0xbab   :  { %v1044_v47 = vpop.eup %1043 }
 0xbac   :  { %v488_v48 = vadd.f32 1.0, %v1044_v47 }
 0xbae   :  { %1045 = vrcp.f32 %v488_v48 }
 0xbbb   :  { %v1046_v49 = vpop.eup %1045 }
 0xbbc   :  { %v492_v53 = vmul.f32 %v1046_v49, %v406_v31 }
 0xc1c   :  { %v495_v50 = vpop.permute.xlu1 %494 }
 0xc1d   :  { %v497_v51 = vmul.f32 %v1046_v49, %v495_v50 }
 0xc1f   :  { %499 = vrot.lane.b32.xlu0 %v497_v51, %s1140_s7 }
 0xc91   :  { %v500_v54 = vpop.permute.xlu0 %499 }
 0xc92   :  { %v502_v55 = vadd.f32 %v500_v54, %v492_v53 }
 0xc94   :  { %1047 = vtanh.f32 %v502_v55 }
 0xca1   :  { %v1048_v58 = vpop.eup %1047 }
 0xca2   :  { %505 = vrot.lane.b32.xlu1 %v1048_v58, %s1139_s30 }
 0xd14   :  { %v506_v59 = vpop.permute.xlu1 %505 }
 0xd15   :  { %v1309_v60 = vmul.f32 %v1046_v49, %v506_v59  ;;  %v891_v49 = vld [vmem:[%s1389_s0 + $0xe] sm:$0x3]  ;;  %s1141_s0 = smov 96  }
 0xd17   :  { %v517_v61 = vpack.c.bf16 %v1309_v60, %v1309_v60 }
 0xd19   :  { %523 = vrot.lane.b32.xlu0 %v517_v61, %s1140_s7 }
 0xd8b   :  { %v524_v62 = vpop.permute.xlu0 %523 }
 0xd8c   :  { %965 = vmatmul.mubr.msk.bf16.vlgmr.msra.gmra.mxu1 %vm52_vm2, %v524_v62 }
 0xd8d   :  { %980 = vmatprep.mubr.msk.bf16.mxu1 %vm1138_vm0, %v1137_v1  ;;  %977 = vmatpush3.bf16.msra.mxu1 %v1007_v42 }
 0xd8e   :  { %978 = vmatprep.subr.bf16.mxu1 %v1137_v1 }
 0xd91   :  { %979 = vmatpush3.bf16.msra.mxu1 %v1008_v43 }
 0xe4c   :  { %v574_v0 = vpop.f32.mrf.mxu1 }
 0xe4d   :  { %v580_v2 = vadd.f32 %v881_v63, %v574_v0 }
 0xe4e   :  { %v966_v3 = vpop.f32.mrf.mxu1 }
 0xe4f   :  { %1049 = vtanh.f32 %v580_v2  ;;  %v885_v7 = vmul.f32 -1.442695, %v580_v2 }
 0xe50   :  { %v577_v4 = vpop.f32.mrf.mxu1 }
 0xe51   :  { %1051 = vpow2.f32 %v885_v7 }
 0xe52   :  { %v967_v5 = vpop.f32.mrf.mxu1 }
 0xe5c   :  { %v1050_v6 = vpop.eup %1049 }
 0xe5d   :  { %590 = vrot.lane.b32.xlu1 %v1050_v6, %s1139_s30 }
 0xe5e   :  { %v1052_v8 = vpop.eup %1051 }
 0xe5f   :  { %v584_v9 = vadd.f32 1.0, %v1052_v8 }
 0xe61   :  { %1053 = vrcp.f32 %v584_v9 }
 0xe6e   :  { %v1054_v10 = vpop.eup %1053 }
 0xe6f   :  { %v588_v14 = vmul.f32 %v1054_v10, %v502_v55 }
 0xecf   :  { %v591_v11 = vpop.permute.xlu1 %590 }
 0xed0   :  { %v593_v13 = vmul.f32 %v1054_v10, %v591_v11 }
 0xed2   :  { %595 = vrot.lane.b32.xlu0 %v593_v13, %s1140_s7 }
 0xf44   :  { %v596_v15 = vpop.permute.xlu0 %595 }
 0xf45   :  { %v598_v16 = vadd.f32 %v596_v15, %v588_v14 }
 0xf47   :  { %1055 = vtanh.f32 %v598_v16 }
 0xf54   :  { %v1056_v19 = vpop.eup %1055 }
 0xf55   :  { %601 = vrot.lane.b32.xlu1 %v1056_v19, %s1139_s30 }
 0xfc7   :  { %v602_v20 = vpop.permute.xlu1 %601 }
 0xfc8   :  { %v604_v21 = vmul.f32 %v1054_v10, %v602_v20 }
 0xfca   :  { %v613_v22 = vpack.c.bf16 %v604_v21, %v604_v21 }
 0xfcc   :  { %619 = vrot.lane.b32.xlu0 %v613_v22, %s1140_s7 }
0x103e   :  { %v620_v23 = vpop.permute.xlu0 %619 }
0x103f   :  { %973 = vmatmul.mubr.msk.bf16.vlgmr.msra.gmra.mxu0 %vm52_vm2, %v620_v23 }
0x10ff   :  { %v670_v25 = vpop.f32.mrf.mxu0 }
0x1100   :  { %v676_v26 = vadd.f32 %v886_v24, %v670_v25 }
0x1101   :  { %v974_v27 = vpop.f32.mrf.mxu0 }
0x1102   :  { %1057 = vtanh.f32 %v676_v26  ;;  %v890_v32 = vmul.f32 -1.442695, %v676_v26 }
0x1103   :  { %v673_v28 = vpop.f32.mrf.mxu0 }
0x1104   :  { %1059 = vpow2.f32 %v890_v32 }
0x1105   :  { %v975_v30 = vpop.f32.mrf.mxu0 }
0x110f   :  { %v1058_v31 = vpop.eup %1057 }
0x1110   :  { %686 = vrot.lane.b32.xlu1 %v1058_v31, %s1139_s30 }
0x1111   :  { %v1060_v33 = vpop.eup %1059 }
0x1112   :  { %v680_v34 = vadd.f32 1.0, %v1060_v33 }
0x1114   :  { %1061 = vrcp.f32 %v680_v34 }
0x1121   :  { %v1062_v35 = vpop.eup %1061 }
0x1122   :  { %v684_v39 = vmul.f32 %v1062_v35, %v598_v16 }
0x1182   :  { %v687_v37 = vpop.permute.xlu1 %686 }
0x1183   :  { %v689_v38 = vmul.f32 %v1062_v35, %v687_v37 }
0x1185   :  { %691 = vrot.lane.b32.xlu0 %v689_v38, %s1140_s7 }
0x11f7   :  { %v692_v40 = vpop.permute.xlu0 %691 }
0x11f8   :  { %v694_v41 = vadd.f32 %v692_v40, %v684_v39 }
0x11fa   :  { %1063 = vtanh.f32 %v694_v41 }
0x1207   :  { %v1064_v44 = vpop.eup %1063 }
0x1208   :  { %697 = vrot.lane.b32.xlu1 %v1064_v44, %s1139_s30 }
0x127a   :  { %v698_v45 = vpop.permute.xlu1 %697 }
0x127b   :  { %v700_v46 = vmul.f32 %v1062_v35, %v698_v45 }
0x127d   :  { %v709_v47 = vpack.c.bf16 %v700_v46, %v700_v46 }
0x127f   :  { %715 = vrot.lane.b32.xlu0 %v709_v47, %s1140_s7 }
0x12f1   :  { %v716_v48 = vpop.permute.xlu0 %715 }
0x12f2   :  { %981 = vmatmul.mubr.msk.bf16.vlgmr.msra.gmra.mxu1 %vm52_vm2, %v716_v48 }
0x13b2   :  { %v766_v50 = vpop.f32.mrf.mxu1 }
0x13b3   :  { %v772_v51 = vadd.f32 %v891_v49, %v766_v50 }
0x13b4   :  { %v982_v53 = vpop.f32.mrf.mxu1 }
0x13b5   :  { %1065 = vtanh.f32 %v772_v51  ;;  %v895_v56 = vmul.f32 -1.442695, %v772_v51 }
0x13b6   :  { %v769_v1 = vpop.f32.mrf.mxu1 }
0x13b7   :  { %1067 = vpow2.f32 %v895_v56 }
0x13b8   :  { %v983_v54 = vpop.f32.mrf.mxu1 }
0x13c2   :  { %v1066_v55 = vpop.eup %1065 }
0x13c3   :  { %782 = vrot.lane.b32.xlu1 %v1066_v55, %s1139_s30 }
0x13c4   :  { %v1068_v57 = vpop.eup %1067 }
0x13c5   :  { %v776_v58 = vadd.f32 1.0, %v1068_v57 }
0x13c7   :  { %1069 = vrcp.f32 %v776_v58 }
0x13d4   :  { %v1070_v59 = vpop.eup %1069 }
0x13d5   :  { %v780_v63 = vmul.f32 %v1070_v59, %v694_v41 }
0x1435   :  { %v783_v61 = vpop.permute.xlu1 %782 }
0x1436   :  { %v785_v62 = vmul.f32 %v1070_v59, %v783_v61 }
0x1438   :  { %787 = vrot.lane.b32.xlu0 %v785_v62, %s1140_s7 }
0x143c   :  { %222 = vrot.lane.b32.xlu0 %v1243_v52, %s1140_s7 }
0x1440   :  { %414 = vrot.lane.b32.xlu0 %v1287_v36, %s1140_s7 }
0x1444   :  { %606 = vrot.lane.b32.xlu0 %v604_v21, %s1140_s7 }
0x14aa   :  { %v788_v0 = vpop.permute.xlu0 %787 }
0x14ab   :  { %v790_v2 = vadd.f32 %v788_v0, %v780_v63 }
0x14ad   :  { %1071 = vtanh.f32 %v790_v2 }
0x14ae   :  { %v223_v3 = vpop.permute.xlu0 %222 }
0x14af   :  { %226 = vst.msk [vmem:[#allocation4 + $0x2] sm:$0x3] %vm28_vm1, %v223_v3 }
0x14b2   :  { %v415_v4 = vpop.permute.xlu0 %414 }
0x14b3   :  { %418 = vst.msk [vmem:[#allocation4 + $0x6] sm:$0x3] %vm28_vm1, %v415_v4 }
0x14b6   :  { %v607_v5 = vpop.permute.xlu0 %606 }
0x14b7   :  { %610 = vst.msk [vmem:[#allocation4 + $0xa] sm:$0x3] %vm28_vm1, %v607_v5 }
0x14ba   :  { %v1072_v6 = vpop.eup %1071 }
0x14bb   :  { %793 = vrot.lane.b32.xlu1 %v1072_v6, %s1139_s30  ;;  %s832_s30 = sshll.u32 %s1142_s1, 4  ;;  %s833_s30 = int_to_ptr.vmem [resolvable:$true] %s832_s30 }
0x14bc   :  { %s1073_s28 = scalar_lea.vmem %s833_s30, 32  ;;  %p1078_p1 = scmp.lt.s32.totalorder %s833_s30, %s833_s30 }
0x14bd   :  { %p1074_p0 = scmp.ne.s32.totalorder %s833_s30, %s1073_s28  ;;  %p1079_p2 = scmp.lt.s32.totalorder %s1073_s28, %s1073_s28 }
0x14bf   :  { %126 = vrot.lane.b32.xlu1 %v1221_v29, %s1140_s7  ;;  %p1080_p3 = por %p1079_p2, %p1078_p1 }
0x14c1   :  { %p1081_p4 = pnand %p1080_p3, %p1074_p0 }
0x14c3   :  { %318 = vrot.lane.b32.xlu1 %v1265_v12, %s1140_s7 }
0x14c7   :  { %510 = vrot.lane.b32.xlu1 %v1309_v60, %s1140_s7 }
0x14cb   :  { %702 = vrot.lane.b32.xlu1 %v700_v46, %s1140_s7 }
0x152d   :  { %v794_v52 = vpop.permute.xlu1 %793 }
0x152e   :  { %v796_v36 = vmul.f32 %v1070_v59, %v794_v52 }
0x1530   :  { %798 = vrot.lane.b32.xlu0 %v796_v36, %s1140_s7 }
0x1531   :  { %v127_v7 = vpop.permute.xlu1 %126 }
0x1532   :  { %130 = vst.msk [vmem:[#allocation4] sm:$0x3] %vm28_vm1, %v127_v7 }
0x1534   :  { %805 = vrot.lane.b32.xlu0 %v790_v2, %s1141_s0 }
0x1535   :  { %v319_v8 = vpop.permute.xlu1 %318 }
0x1536   :  { %322 = vst.msk [vmem:[#allocation4 + $0x4] sm:$0x3] %vm28_vm1, %v319_v8 }
0x1539   :  { %v511_v29 = vpop.permute.xlu1 %510 }
0x153a   :  { %514 = vst.msk [vmem:[#allocation4 + $0x8] sm:$0x3] %vm28_vm1, %v511_v29 }
0x153d   :  { %v703_v12 = vpop.permute.xlu1 %702 }
0x153e   :  { %706 = vst.msk [vmem:[#allocation4 + $0xc] sm:$0x3] %vm28_vm1, %v703_v12 }
0x15a2   :  { %v799_v60 = vpop.permute.xlu0 %798 }
0x15a3   :  { %802 = vst.msk [vmem:[#allocation4 + $0xe] sm:$0x3] %vm28_vm1, %v799_v60  ;;  %803 = vst.msk [vmem:[#allocation2] sm:$0x3] %vm28_vm1, %v799_v60 }
0x15a4   :  { %812 = vst.msk [vmem:[#allocation6] sm:$0x3] %vm28_vm1, %v799_v60 }
0x15a5   :  { %1084 = shalt.err (!%p1081_p4)
}
0x15a6   :  { %835 = dma.vmem_to_hbm [thread:$0]  %s833_s30, 32, %s1394_s5, [#allocation7]  }
0x15a7   :  { %s1093_s8 = scalar_lea.vmem %s820_s26, 256  ;;  %p1098_p6 = scmp.lt.s32.totalorder %s820_s26, %s820_s26 }
0x15a8   :  { %p1094_p5 = scmp.ne.s32.totalorder %s820_s26, %s1093_s8  ;;  %p1099_p7 = scmp.lt.s32.totalorder %s1093_s8, %s1093_s8 }
0x15aa   :  { %p1100_p8 = por %p1099_p7, %p1098_p6 }
0x15ac   :  { %p1101_p9 = pnand %p1100_p8, %p1094_p5 }
0x15ae   :  { %1104 = shalt.err (!%p1101_p9)
}
0x15af   :  { %s1145_s9 = smov 2   ;;  %v806_v9 = vpop.permute.xlu0 %805  ;;  %s1113_s5 = scalar_lea.vmem %s843_s27, 32 }
0x15b0   :  { %825 = dma.vmem_to_hbm [thread:$0]  %s820_s26, 256, %s1393_s4, [#allocation5], %s1140_s7, %s1140_s7, %s1145_s9   ;;  %808 = vst.msk [vmem:[#allocation3] sm:$0x3] %vm28_vm1, %v806_v9  ;;  %813 = vst.msk [vmem:[#allocation8] sm:$0x3] %vm28_vm1, %v806_v9 }
0x15b1   :  { %p1114_p10 = scmp.ne.s32.totalorder %s843_s27, %s1113_s5  ;;  %p1118_p11 = scmp.lt.s32.totalorder %s843_s27, %s843_s27 }
0x15b2   :  { %p1119_p12 = scmp.lt.s32.totalorder %s1113_s5, %s1113_s5 }
0x15b4   :  { %p1120_p13 = por %p1119_p12, %p1118_p11 }
0x15b6   :  { %p1121_p0 = pnand %p1120_p13, %p1114_p10 }
0x15b8   :  { %1124 = shalt.err (!%p1121_p0)
}
0x15b9   :  { %845 = dma.vmem_to_hbm [thread:$0]  %s843_s27, 32, %s1395_s6, [#allocation7]  }
0x15ba   :  { %1133 = dma.done.wait [#allocation5], 256  }
0x15bb   :  { %1134 = vsyncadd [#allocation5], 4294967040 }
0x15bc   :  { %1135 = dma.done.wait [#allocation7], 64  }
0x15bd   :  { %1136 = vsyncadd [#allocation7], 4294967232 }
0x15be   :  { %855 = vsyncpa [#allocation5], 1 }
0x15bf   :  { %856 = vsyncpa [#allocation7], 1 }

</bundles_post_ra>
